<compile_context>
chip_gen: v7x
topology: tpu7x:2x2x1
jax: 0.10.0
libtpu: 0.0.40
codegen_flags: <defaults>
</compile_context>

<pallas_src>
import jax
import jax.numpy as jnp
import numpy as np
from jax.experimental import pallas as pl
from jax.experimental.pallas import tpu as pltpu


def _decoder_kernel(tok_ref,              # (T*N,) int32, SMEM
                    e_enc_ref,            # (N, S) f32: enc . W_e + energy_b (step-invariant)
                    enc_ref,              # (N, S, 2H) VMEM, resident
                    h0_ref, c0_ref,       # (N, H) initial state
                    weh_ref,              # (1, H) hidden part of energy weight
                    wih_ctx_ref,          # (2H, 4H)
                    whh_ref,              # (H, 4H)
                    embg_ref,             # (V, 4H) emb @ W_ih_emb^T + b_ih + b_hh
                    wfc_ref, bfc_ref,     # (H, Opad), (1, Opad)
                    pred_ref,             # out (T, N, Opad), VMEM-resident
                    h_out_ref, c_out_ref, # out (N, H)
                    emb_s):               # VMEM scratch (N, 4H)
    enc = enc_ref[...]                    # (N, S, 2H) -- loaded once, reused every step
    e_enc = e_enc_ref[...]                # (N, S)
    weh = weh_ref[...]                    # (1, H)
    wih_ctx = wih_ctx_ref[...]            # (2H, 4H)
    whh = whh_ref[...]                    # (H, 4H)
    wfc = wfc_ref[...]                    # (H, Opad)
    bfc = bfc_ref[...]                    # (1, Opad)

    N, S, _ = enc.shape
    H = h0_ref.shape[-1]
    T = pred_ref.shape[0]

    def step(t, carry):
        h, c = carry                                                    # (N, H) each

        # ---- attention energy: relu(W_h h + (W_e enc + b)), enc term hoisted --
        e_h = jnp.sum(h * weh, axis=-1, keepdims=True)                  # (N, 1)
        energy = jnp.maximum(e_enc + e_h, 0.0)                          # (N, S)

        # ---- softmax over the sequence (lane) axis, exact divide ---------------
        m = jnp.max(energy, axis=-1, keepdims=True)
        ex = jnp.exp(energy - m)
        attn = ex / jnp.sum(ex, axis=-1, keepdims=True)                 # (N, S)

        # ---- context vector: sum_s attn[n,s] * enc[n,s,:] ----------------------
        context = jnp.sum(attn[:, :, None] * enc, axis=1)               # (N, 2H)

        # ---- embedding->gate rows for this step's tokens (biases pre-folded) ---
        # gathered by dynamic sublane slices into a small VMEM scratch (no concat)
        for n in range(N):
            emb_s[pl.ds(n, 1), :] = embg_ref[pl.ds(tok_ref[t * N + n], 1), :]
        emb_g = emb_s[...]                                              # (N, 4H)

        # ---- single-step LSTM: concat-free split matmuls -----------------------
        gates = (jnp.dot(context, wih_ctx, preferred_element_type=jnp.float32)
                 + jnp.dot(h, whh, preferred_element_type=jnp.float32)
                 + emb_g)                                               # (N, 4H)
        # full-width nonlinearities: one sigmoid pass + one tanh pass on (N, 4H)
        sig = jax.nn.sigmoid(gates)
        th = jnp.tanh(gates)
        i_g = sig[:, 0 * H:1 * H]
        f_g = sig[:, 1 * H:2 * H]
        g_g = th[:, 2 * H:3 * H]
        o_g = sig[:, 3 * H:4 * H]
        c_new = f_g * c + i_g * g_g
        h_new = o_g * jnp.tanh(c_new)

        # ---- output projection into lane-dense 128-wide padded slab ------------
        # (written into the VMEM-resident preds block; single HBM writeback later)
        pred = jnp.dot(h_new, wfc, preferred_element_type=jnp.float32) + bfc
        pred_ref[pl.ds(t, 1), :, :] = pred[None]

        return h_new, c_new

    h_fin, c_fin = jax.lax.fori_loop(0, T, step, (h0_ref[...], c0_ref[...]),
                                     unroll=True)
    h_out_ref[...] = h_fin
    c_out_ref[...] = c_fin


def init_params(key, input_size, emb_size, hidden_size, output_size):
    ks = jax.random.split(key, 8)
    H, E, O = hidden_size, emb_size, output_size
    s = 0.1
    return dict(
        emb=jax.random.normal(ks[0], (input_size, E), jnp.float32) * s,
        energy_w=jax.random.normal(ks[1], (1, 3 * H), jnp.float32) * s,   # nn.Linear(3H, 1)
        energy_b=jax.random.normal(ks[2], (1,), jnp.float32) * s,
        lstm_w_ih=jax.random.normal(ks[3], (4 * H, 2 * H + E), jnp.float32) * s,
        lstm_w_hh=jax.random.normal(ks[4], (4 * H, H), jnp.float32) * s,
        lstm_b_ih=jax.random.normal(ks[5], (4 * H,), jnp.float32) * s,
        lstm_b_hh=jax.random.normal(ks[6], (4 * H,), jnp.float32) * s,
        fc_w=jax.random.normal(ks[7], (O, H), jnp.float32) * s,           # nn.Linear(H, O)
        fc_b=jnp.zeros((O,), jnp.float32),
    )


@jax.jit
def decoder_decode(tokens, encoder_states, hidden, cell, params):
    """Fused T-step (teacher-forced) decode in a single pallas_call.
       tokens: (T, N) int32; encoder_states: (S, N, 2H); hidden, cell: (1, N, H).
       Returns (preds (T, N, O), hidden (1, N, H), cell (1, N, H))."""
    T, N = tokens.shape
    S, _, twoH = encoder_states.shape
    H = hidden.shape[-1]
    O = params['fc_w'].shape[0]
    Opad = ((O + 127) // 128) * 128

    # ---- parameter prep (plain JAX, once per decode, not per step) -------------
    enc_nsd = jnp.transpose(encoder_states, (1, 0, 2))               # (N, S, 2H)
    h0, c0 = hidden[0], cell[0]
    weh = params['energy_w'][:, :H]                                  # (1, H)
    wee = params['energy_w'][:, H:]                                  # (1, 2H)
    # hoisted step-invariant encoder energy term with the bias folded in
    e_enc = jnp.einsum('nsd,d->ns', enc_nsd, wee[0]) + params['energy_b'][0]  # (N, S)
    wih = params['lstm_w_ih']                                        # (4H, 2H+E)
    wih_ctx = wih[:, :twoH].T                                        # (2H, 4H)
    wih_emb = wih[:, twoH:].T                                        # (E, 4H)
    bl = (params['lstm_b_ih'] + params['lstm_b_hh'])[None, :]        # (1, 4H)
    # embedding->gate table with both LSTM biases folded in (dropout = identity)
    embg = params['emb'] @ wih_emb + bl                              # (V, 4H)
    wfc_pad = jnp.zeros((H, Opad), jnp.float32).at[:, :O].set(params['fc_w'].T)
    bfc_pad = jnp.zeros((1, Opad), jnp.float32).at[:, :O].set(params['fc_b'])
    tok_flat = tokens.reshape(-1).astype(jnp.int32)                  # (T*N,) 1D SMEM

    vmem = pl.BlockSpec(memory_space=pltpu.MemorySpace.VMEM)
    smem = pl.BlockSpec(memory_space=pltpu.MemorySpace.SMEM)

    preds_pad, h_new, c_new = pl.pallas_call(
        _decoder_kernel,
        out_shape=(jax.ShapeDtypeStruct((T, N, Opad), jnp.float32),
                   jax.ShapeDtypeStruct((N, H), jnp.float32),
                   jax.ShapeDtypeStruct((N, H), jnp.float32)),
        in_specs=[smem,                    # tokens (flat, SMEM)
                  vmem,                    # e_enc
                  vmem,                    # enc
                  vmem, vmem,              # h0, c0
                  vmem,                    # weh
                  vmem, vmem,              # wih_ctx, whh
                  vmem,                    # embg
                  vmem, vmem],             # wfc_pad, bfc_pad
        out_specs=(vmem, vmem, vmem),
        scratch_shapes=[pltpu.VMEM((N, 4 * H), jnp.float32)],        # emb gather
    )(tok_flat, e_enc, enc_nsd, h0, c0, weh,
      wih_ctx, params['lstm_w_hh'].T, embg, wfc_pad, bfc_pad)

    return preds_pad[:, :, :O], h_new[None], c_new[None]


def decoder_forward(x_tok, encoder_states, hidden, cell, params):
    """Single-step API matching the PyTorch forward (T=1 fused decode)."""
    preds, h, c = decoder_decode(x_tok[None, :], encoder_states, hidden, cell, params)
    return preds[0], h, c


# ---------------------------- pure-JAX reference -------------------------------
def decoder_reference(x_tok, encoder_states, hidden, cell, params):
    """Mirrors the PyTorch forward for one token."""
    S, N, twoH = encoder_states.shape
    H = hidden.shape[-1]
    emb_x = jnp.take(params['emb'], x_tok, axis=0)[None]             # (1, N, E)
    h_rep = jnp.broadcast_to(hidden, (S, N, H))
    cat_he = jnp.concatenate([h_rep, encoder_states], axis=2)        # (S, N, 3H)
    energy = jax.nn.relu(cat_he @ params['energy_w'].T + params['energy_b'])  # (S,N,1)
    attn = jax.nn.softmax(energy, axis=0)
    attn_b = jnp.transpose(attn, (1, 2, 0))                          # (N, 1, S)
    enc_b = jnp.transpose(encoder_states, (1, 0, 2))                 # (N, S, 2H)
    ctx = jnp.transpose(attn_b @ enc_b, (1, 0, 2))                   # (1, N, 2H)
    rnn_in = jnp.concatenate([ctx, emb_x], axis=2)[0]                # (N, 2H+E)
    gates = (rnn_in @ params['lstm_w_ih'].T + params['lstm_b_ih']
             + hidden[0] @ params['lstm_w_hh'].T + params['lstm_b_hh'])
    i_g = jax.nn.sigmoid(gates[:, 0 * H:1 * H])
    f_g = jax.nn.sigmoid(gates[:, 1 * H:2 * H])
    g_g = jnp.tanh(gates[:, 2 * H:3 * H])
    o_g = jax.nn.sigmoid(gates[:, 3 * H:4 * H])
    c_new = f_g * cell[0] + i_g * g_g
    h_new = o_g * jnp.tanh(c_new)
    preds = h_new @ params['fc_w'].T + params['fc_b']
    return preds, h_new[None], c_new[None]


def decoder_reference_decode(tokens, encoder_states, hidden, cell, params):
    preds = []
    h, c = hidden, cell
    for t in range(tokens.shape[0]):
        p, h, c = decoder_reference(tokens[t], encoder_states, h, c, params)
        preds.append(p)
    return jnp.stack(preds, axis=0), h, c


if __name__ == "__main__":
    input_size = 20     # vocab
    emb_size = 16
    hidden_size = 32
    output_size = 10
    num_layers = 1      # required for the PyTorch forward to be shape-consistent
    S, N, T = 8, 2, 4

    root = jax.random.PRNGKey(0)
    kp, kx, ke, kh, kc = jax.random.split(root, 5)
    params = init_params(kp, input_size, emb_size, hidden_size, output_size)

    tokens = jax.random.randint(kx, (T, N), 0, input_size, dtype=jnp.int32)
    encoder_states = jax.random.normal(ke, (S, N, 2 * hidden_size), jnp.float32)
    hidden = jax.random.normal(kh, (num_layers, N, hidden_size), jnp.float32)
    cell = jax.random.normal(kc, (num_layers, N, hidden_size), jnp.float32)

    # fused multi-step decode (one pallas_call, in-kernel unrolled recurrence)
    preds, h_new, c_new = decoder_decode(tokens, encoder_states, hidden, cell, params)
    jax.block_until_ready((preds, h_new, c_new))

    preds_r, h_r, c_r = decoder_reference_decode(tokens, encoder_states, hidden, cell, params)
    assert preds.shape == (T, N, output_size)
    assert h_new.shape == (num_layers, N, hidden_size)
    assert c_new.shape == (num_layers, N, hidden_size)
    np.testing.assert_allclose(np.asarray(preds), np.asarray(preds_r), rtol=1e-3, atol=1e-4)
    np.testing.assert_allclose(np.asarray(h_new), np.asarray(h_r), rtol=1e-3, atol=1e-4)
    np.testing.assert_allclose(np.asarray(c_new), np.asarray(c_r), rtol=1e-3, atol=1e-4)

    # single-step API (matches the original PyTorch Decoder.forward signature)
    p1, h1, c1 = decoder_forward(tokens[0], encoder_states, hidden, cell, params)
    jax.block_until_ready((p1, h1, c1))
    p1_r, _, _ = decoder_reference(tokens[0], encoder_states, hidden, cell, params)
    np.testing.assert_allclose(np.asarray(p1), np.asarray(p1_r), rtol=1e-3, atol=1e-4)

    print("KERNEL_OK")
</pallas_src>

<mosaic_0001>
module attributes {stable_mosaic.version = 11 : i64} {
  func.func @_decoder_kernel(%arg0: memref<8xi32, #tpu.memory_space<smem>>, %arg1: memref<2x8xf32, #tpu.memory_space<vmem>>, %arg2: memref<2x8x64xf32, #tpu.memory_space<vmem>>, %arg3: memref<2x32xf32, #tpu.memory_space<vmem>>, %arg4: memref<2x32xf32, #tpu.memory_space<vmem>>, %arg5: memref<1x32xf32, #tpu.memory_space<vmem>>, %arg6: memref<64x128xf32, #tpu.memory_space<vmem>>, %arg7: memref<32x128xf32, #tpu.memory_space<vmem>>, %arg8: memref<20x128xf32, #tpu.memory_space<vmem>>, %arg9: memref<32x128xf32, #tpu.memory_space<vmem>>, %arg10: memref<1x128xf32, #tpu.memory_space<vmem>>, %arg11: memref<4x2x128xf32, #tpu.memory_space<vmem>>, %arg12: memref<2x32xf32, #tpu.memory_space<vmem>>, %arg13: memref<2x32xf32, #tpu.memory_space<vmem>>, %arg14: memref<2x128xf32, #tpu.memory_space<vmem>>) attributes {dimension_semantics = [], scalar_prefetch = 0 : i64, scratch_operands = 1 : i64, tpu.core_type = #tpu.core_type<tc>} {
    %c0 = arith.constant 0 : index
    %c0_0 = arith.constant 0 : index
    %c0_1 = arith.constant 0 : index
    %0 = vector.load %arg2[%c0, %c0_0, %c0_1] : memref<2x8x64xf32, #tpu.memory_space<vmem>>, vector<2x8x64xf32>
    %c0_2 = arith.constant 0 : index
    %c0_3 = arith.constant 0 : index
    %1 = vector.load %arg1[%c0_2, %c0_3] : memref<2x8xf32, #tpu.memory_space<vmem>>, vector<2x8xf32>
    %c0_4 = arith.constant 0 : index
    %c0_5 = arith.constant 0 : index
    %2 = vector.load %arg5[%c0_4, %c0_5] : memref<1x32xf32, #tpu.memory_space<vmem>>, vector<1x32xf32>
    %c0_6 = arith.constant 0 : index
    %c0_7 = arith.constant 0 : index
    %3 = vector.load %arg6[%c0_6, %c0_7] : memref<64x128xf32, #tpu.memory_space<vmem>>, vector<64x128xf32>
    %c0_8 = arith.constant 0 : index
    %c0_9 = arith.constant 0 : index
    %4 = vector.load %arg7[%c0_8, %c0_9] : memref<32x128xf32, #tpu.memory_space<vmem>>, vector<32x128xf32>
    %c0_10 = arith.constant 0 : index
    %c0_11 = arith.constant 0 : index
    %5 = vector.load %arg9[%c0_10, %c0_11] : memref<32x128xf32, #tpu.memory_space<vmem>>, vector<32x128xf32>
    %c0_12 = arith.constant 0 : index
    %c0_13 = arith.constant 0 : index
    %6 = vector.load %arg10[%c0_12, %c0_13] : memref<1x128xf32, #tpu.memory_space<vmem>>, vector<1x128xf32>
    %c0_14 = arith.constant 0 : index
    %c0_15 = arith.constant 0 : index
    %7 = vector.load %arg3[%c0_14, %c0_15] : memref<2x32xf32, #tpu.memory_space<vmem>>, vector<2x32xf32>
    %c0_16 = arith.constant 0 : index
    %c0_17 = arith.constant 0 : index
    %8 = vector.load %arg4[%c0_16, %c0_17] : memref<2x32xf32, #tpu.memory_space<vmem>>, vector<2x32xf32>
    %c0_i32 = arith.constant 0 : i32
    %9 = vector.broadcast %2 : vector<1x32xf32> to vector<2x32xf32>
    %10 = arith.mulf %7, %9 : vector<2x32xf32>
    %cst = arith.constant dense<0.000000e+00> : vector<2xf32>
    %11 = vector.multi_reduction <add>, %10, %cst [1] : vector<2x32xf32> to vector<2xf32>
    %12 = vector.shape_cast %11 : vector<2xf32> to vector<2x1xf32>
    %13 = vector.broadcast %12 : vector<2x1xf32> to vector<2x8xf32>
    %14 = arith.addf %1, %13 : vector<2x8xf32>
    %cst_18 = arith.constant 0.000000e+00 : f32
    %15 = vector.broadcast %cst_18 : f32 to vector<2x8xf32>
    %16 = arith.maximumf %14, %15 : vector<2x8xf32>
    %cst_19 = arith.constant dense<0xFF800000> : vector<2xf32>
    %17 = vector.multi_reduction <maximumf>, %16, %cst_19 [1] : vector<2x8xf32> to vector<2xf32>
    %18 = vector.shape_cast %17 : vector<2xf32> to vector<2x1xf32>
    %19 = vector.broadcast %18 : vector<2x1xf32> to vector<2x8xf32>
    %20 = arith.subf %16, %19 : vector<2x8xf32>
    %21 = math.exp %20 : vector<2x8xf32>
    %cst_20 = arith.constant dense<0.000000e+00> : vector<2xf32>
    %22 = vector.multi_reduction <add>, %21, %cst_20 [1] : vector<2x8xf32> to vector<2xf32>
    %23 = vector.shape_cast %22 : vector<2xf32> to vector<2x1xf32>
    %24 = vector.broadcast %23 : vector<2x1xf32> to vector<2x8xf32>
    %25 = arith.divf %21, %24 : vector<2x8xf32>
    %26 = vector.shape_cast %25 : vector<2x8xf32> to vector<2x8x1xf32>
    %27 = vector.broadcast %26 : vector<2x8x1xf32> to vector<2x8x64xf32>
    %28 = arith.mulf %27, %0 : vector<2x8x64xf32>
    %cst_21 = arith.constant dense<0.000000e+00> : vector<2x64xf32>
    %29 = vector.multi_reduction <add>, %28, %cst_21 [1] : vector<2x8x64xf32> to vector<2x64xf32>
    %c2_i32 = arith.constant 2 : i32
    %30 = arith.muli %c0_i32, %c2_i32 : i32
    %c0_i32_22 = arith.constant 0 : i32
    %31 = arith.addi %30, %c0_i32_22 : i32
    %32 = arith.index_cast %31 : i32 to index
    %33 = memref.load %arg0[%32] : memref<8xi32, #tpu.memory_space<smem>>
    %34 = arith.index_cast %33 : i32 to index
    %c0_23 = arith.constant 0 : index
    %35 = vector.load %arg8[%34, %c0_23] : memref<20x128xf32, #tpu.memory_space<vmem>>, vector<1x128xf32>
    %c0_24 = arith.constant 0 : index
    %c0_25 = arith.constant 0 : index
    %36 = vector.load %arg14[%c0_24, %c0_25] : memref<2x128xf32, #tpu.memory_space<vmem>>, vector<1x128xf32>
    tpu.vector_store %arg14[%c0_24, %c0_25], %35 {strides = array<i32>} : memref<2x128xf32, #tpu.memory_space<vmem>>, vector<1x128xf32>,
    %c2_i32_26 = arith.constant 2 : i32
    %37 = arith.muli %c0_i32, %c2_i32_26 : i32
    %c1_i32 = arith.constant 1 : i32
    %38 = arith.addi %37, %c1_i32 : i32
    %39 = arith.index_cast %38 : i32 to index
    %40 = memref.load %arg0[%39] : memref<8xi32, #tpu.memory_space<smem>>
    %41 = arith.index_cast %40 : i32 to index
    %c0_27 = arith.constant 0 : index
    %42 = vector.load %arg8[%41, %c0_27] : memref<20x128xf32, #tpu.memory_space<vmem>>, vector<1x128xf32>
    %c1 = arith.constant 1 : index
    %c0_28 = arith.constant 0 : index
    %43 = vector.load %arg14[%c1, %c0_28] : memref<2x128xf32, #tpu.memory_space<vmem>>, vector<1x128xf32>
    tpu.vector_store %arg14[%c1, %c0_28], %42 {strides = array<i32>} : memref<2x128xf32, #tpu.memory_space<vmem>>, vector<1x128xf32>,
    %c0_29 = arith.constant 0 : index
    %c0_30 = arith.constant 0 : index
    %44 = vector.load %arg14[%c0_29, %c0_30] : memref<2x128xf32, #tpu.memory_space<vmem>>, vector<2x128xf32>
    %cst_31 = arith.constant dense<0.000000e+00> : vector<2x128xf32>
    %45 = tpu.matmul %29, %3, %cst_31 {dimension_numbers = #tpu.dot_dimension_numbers<[1], [0], [0], [1], [0, 0, 1, 1], [], []>} : vector<2x64xf32>, vector<64x128xf32>, vector<2x128xf32> -> vector<2x128xf32>
    %cst_32 = arith.constant dense<0.000000e+00> : vector<2x128xf32>
    %46 = tpu.matmul %7, %4, %cst_32 {dimension_numbers = #tpu.dot_dimension_numbers<[1], [0], [0], [1], [0, 0, 1, 1], [], []>} : vector<2x32xf32>, vector<32x128xf32>, vector<2x128xf32> -> vector<2x128xf32>
    %47 = arith.addf %45, %46 : vector<2x128xf32>
    %48 = arith.addf %47, %44 : vector<2x128xf32>
    %49 = arith.negf %48 : vector<2x128xf32>
    %50 = math.exp %49 : vector<2x128xf32>
    %cst_33 = arith.constant 1.000000e+00 : f32
    %51 = vector.broadcast %cst_33 : f32 to vector<2x128xf32>
    %52 = arith.addf %51, %50 : vector<2x128xf32>
    %53 = arith.divf %51, %52 : vector<2x128xf32>
    %54 = math.tanh %48 : vector<2x128xf32>
    %55 = vector.extract_strided_slice %53 {offsets = [0, 0], sizes = [2, 32], strides = [1, 1]} : vector<2x128xf32> to vector<2x32xf32>
    %56 = vector.extract_strided_slice %53 {offsets = [0, 32], sizes = [2, 32], strides = [1, 1]} : vector<2x128xf32> to vector<2x32xf32>
    %57 = vector.extract_strided_slice %54 {offsets = [0, 64], sizes = [2, 32], strides = [1, 1]} : vector<2x128xf32> to vector<2x32xf32>
    %58 = vector.extract_strided_slice %53 {offsets = [0, 96], sizes = [2, 32], strides = [1, 1]} : vector<2x128xf32> to vector<2x32xf32>
    %59 = arith.mulf %56, %8 : vector<2x32xf32>
    %60 = arith.mulf %55, %57 : vector<2x32xf32>
    %61 = arith.addf %59, %60 : vector<2x32xf32>
    %62 = math.tanh %61 : vector<2x32xf32>
    %63 = arith.mulf %58, %62 : vector<2x32xf32>
    %cst_34 = arith.constant dense<0.000000e+00> : vector<2x128xf32>
    %64 = tpu.matmul %63, %5, %cst_34 {dimension_numbers = #tpu.dot_dimension_numbers<[1], [0], [0], [1], [0, 0, 1, 1], [], []>} : vector<2x32xf32>, vector<32x128xf32>, vector<2x128xf32> -> vector<2x128xf32>
    %65 = vector.broadcast %6 : vector<1x128xf32> to vector<2x128xf32>
    %66 = arith.addf %64, %65 : vector<2x128xf32>
    %67 = vector.shape_cast %66 : vector<2x128xf32> to vector<1x2x128xf32>
    %68 = arith.index_cast %c0_i32 : i32 to index
    %c0_35 = arith.constant 0 : index
    %c0_36 = arith.constant 0 : index
    %69 = vector.load %arg11[%68, %c0_35, %c0_36] : memref<4x2x128xf32, #tpu.memory_space<vmem>>, vector<1x2x128xf32>
    tpu.vector_store %arg11[%68, %c0_35, %c0_36], %67 {strides = array<i32>} : memref<4x2x128xf32, #tpu.memory_space<vmem>>, vector<1x2x128xf32>,
    %c1_i32_37 = arith.constant 1 : i32
    %70 = vector.broadcast %2 : vector<1x32xf32> to vector<2x32xf32>
    %71 = arith.mulf %63, %70 : vector<2x32xf32>
    %cst_38 = arith.constant dense<0.000000e+00> : vector<2xf32>
    %72 = vector.multi_reduction <add>, %71, %cst_38 [1] : vector<2x32xf32> to vector<2xf32>
    %73 = vector.shape_cast %72 : vector<2xf32> to vector<2x1xf32>
    %74 = vector.broadcast %73 : vector<2x1xf32> to vector<2x8xf32>
    %75 = arith.addf %1, %74 : vector<2x8xf32>
    %cst_39 = arith.constant 0.000000e+00 : f32
    %76 = vector.broadcast %cst_39 : f32 to vector<2x8xf32>
    %77 = arith.maximumf %75, %76 : vector<2x8xf32>
    %cst_40 = arith.constant dense<0xFF800000> : vector<2xf32>
    %78 = vector.multi_reduction <maximumf>, %77, %cst_40 [1] : vector<2x8xf32> to vector<2xf32>
    %79 = vector.shape_cast %78 : vector<2xf32> to vector<2x1xf32>
    %80 = vector.broadcast %79 : vector<2x1xf32> to vector<2x8xf32>
    %81 = arith.subf %77, %80 : vector<2x8xf32>
    %82 = math.exp %81 : vector<2x8xf32>
    %cst_41 = arith.constant dense<0.000000e+00> : vector<2xf32>
    %83 = vector.multi_reduction <add>, %82, %cst_41 [1] : vector<2x8xf32> to vector<2xf32>
    %84 = vector.shape_cast %83 : vector<2xf32> to vector<2x1xf32>
    %85 = vector.broadcast %84 : vector<2x1xf32> to vector<2x8xf32>
    %86 = arith.divf %82, %85 : vector<2x8xf32>
    %87 = vector.shape_cast %86 : vector<2x8xf32> to vector<2x8x1xf32>
    %88 = vector.broadcast %87 : vector<2x8x1xf32> to vector<2x8x64xf32>
    %89 = arith.mulf %88, %0 : vector<2x8x64xf32>
    %cst_42 = arith.constant dense<0.000000e+00> : vector<2x64xf32>
    %90 = vector.multi_reduction <add>, %89, %cst_42 [1] : vector<2x8x64xf32> to vector<2x64xf32>
    %c2_i32_43 = arith.constant 2 : i32
    %91 = arith.muli %c1_i32_37, %c2_i32_43 : i32
    %c0_i32_44 = arith.constant 0 : i32
    %92 = arith.addi %91, %c0_i32_44 : i32
    %93 = arith.index_cast %92 : i32 to index
    %94 = memref.load %arg0[%93] : memref<8xi32, #tpu.memory_space<smem>>
    %95 = arith.index_cast %94 : i32 to index
    %c0_45 = arith.constant 0 : index
    %96 = vector.load %arg8[%95, %c0_45] : memref<20x128xf32, #tpu.memory_space<vmem>>, vector<1x128xf32>
    %c0_46 = arith.constant 0 : index
    %c0_47 = arith.constant 0 : index
    %97 = vector.load %arg14[%c0_46, %c0_47] : memref<2x128xf32, #tpu.memory_space<vmem>>, vector<1x128xf32>
    tpu.vector_store %arg14[%c0_46, %c0_47], %96 {strides = array<i32>} : memref<2x128xf32, #tpu.memory_space<vmem>>, vector<1x128xf32>,
    %c2_i32_48 = arith.constant 2 : i32
    %98 = arith.muli %c1_i32_37, %c2_i32_48 : i32
    %c1_i32_49 = arith.constant 1 : i32
    %99 = arith.addi %98, %c1_i32_49 : i32
    %100 = arith.index_cast %99 : i32 to index
    %101 = memref.load %arg0[%100] : memref<8xi32, #tpu.memory_space<smem>>
    %102 = arith.index_cast %101 : i32 to index
    %c0_50 = arith.constant 0 : index
    %103 = vector.load %arg8[%102, %c0_50] : memref<20x128xf32, #tpu.memory_space<vmem>>, vector<1x128xf32>
    %c1_51 = arith.constant 1 : index
    %c0_52 = arith.constant 0 : index
    %104 = vector.load %arg14[%c1_51, %c0_52] : memref<2x128xf32, #tpu.memory_space<vmem>>, vector<1x128xf32>
    tpu.vector_store %arg14[%c1_51, %c0_52], %103 {strides = array<i32>} : memref<2x128xf32, #tpu.memory_space<vmem>>, vector<1x128xf32>,
    %c0_53 = arith.constant 0 : index
    %c0_54 = arith.constant 0 : index
    %105 = vector.load %arg14[%c0_53, %c0_54] : memref<2x128xf32, #tpu.memory_space<vmem>>, vector<2x128xf32>
    %cst_55 = arith.constant dense<0.000000e+00> : vector<2x128xf32>
    %106 = tpu.matmul %90, %3, %cst_55 {dimension_numbers = #tpu.dot_dimension_numbers<[1], [0], [0], [1], [0, 0, 1, 1], [], []>} : vector<2x64xf32>, vector<64x128xf32>, vector<2x128xf32> -> vector<2x128xf32>
    %cst_56 = arith.constant dense<0.000000e+00> : vector<2x128xf32>
    %107 = tpu.matmul %63, %4, %cst_56 {dimension_numbers = #tpu.dot_dimension_numbers<[1], [0], [0], [1], [0, 0, 1, 1], [], []>} : vector<2x32xf32>, vector<32x128xf32>, vector<2x128xf32> -> vector<2x128xf32>
    %108 = arith.addf %106, %107 : vector<2x128xf32>
    %109 = arith.addf %108, %105 : vector<2x128xf32>
    %110 = arith.negf %109 : vector<2x128xf32>
    %111 = math.exp %110 : vector<2x128xf32>
    %cst_57 = arith.constant 1.000000e+00 : f32
    %112 = vector.broadcast %cst_57 : f32 to vector<2x128xf32>
    %113 = arith.addf %112, %111 : vector<2x128xf32>
    %114 = arith.divf %112, %113 : vector<2x128xf32>
    %115 = math.tanh %109 : vector<2x128xf32>
    %116 = vector.extract_strided_slice %114 {offsets = [0, 0], sizes = [2, 32], strides = [1, 1]} : vector<2x128xf32> to vector<2x32xf32>
    %117 = vector.extract_strided_slice %114 {offsets = [0, 32], sizes = [2, 32], strides = [1, 1]} : vector<2x128xf32> to vector<2x32xf32>
    %118 = vector.extract_strided_slice %115 {offsets = [0, 64], sizes = [2, 32], strides = [1, 1]} : vector<2x128xf32> to vector<2x32xf32>
    %119 = vector.extract_strided_slice %114 {offsets = [0, 96], sizes = [2, 32], strides = [1, 1]} : vector<2x128xf32> to vector<2x32xf32>
    %120 = arith.mulf %117, %61 : vector<2x32xf32>
    %121 = arith.mulf %116, %118 : vector<2x32xf32>
    %122 = arith.addf %120, %121 : vector<2x32xf32>
    %123 = math.tanh %122 : vector<2x32xf32>
    %124 = arith.mulf %119, %123 : vector<2x32xf32>
    %cst_58 = arith.constant dense<0.000000e+00> : vector<2x128xf32>
    %125 = tpu.matmul %124, %5, %cst_58 {dimension_numbers = #tpu.dot_dimension_numbers<[1], [0], [0], [1], [0, 0, 1, 1], [], []>} : vector<2x32xf32>, vector<32x128xf32>, vector<2x128xf32> -> vector<2x128xf32>
    %126 = vector.broadcast %6 : vector<1x128xf32> to vector<2x128xf32>
    %127 = arith.addf %125, %126 : vector<2x128xf32>
    %128 = vector.shape_cast %127 : vector<2x128xf32> to vector<1x2x128xf32>
    %129 = arith.index_cast %c1_i32_37 : i32 to index
    %c0_59 = arith.constant 0 : index
    %c0_60 = arith.constant 0 : index
    %130 = vector.load %arg11[%129, %c0_59, %c0_60] : memref<4x2x128xf32, #tpu.memory_space<vmem>>, vector<1x2x128xf32>
    tpu.vector_store %arg11[%129, %c0_59, %c0_60], %128 {strides = array<i32>} : memref<4x2x128xf32, #tpu.memory_space<vmem>>, vector<1x2x128xf32>,
    %c2_i32_61 = arith.constant 2 : i32
    %131 = vector.broadcast %2 : vector<1x32xf32> to vector<2x32xf32>
    %132 = arith.mulf %124, %131 : vector<2x32xf32>
    %cst_62 = arith.constant dense<0.000000e+00> : vector<2xf32>
    %133 = vector.multi_reduction <add>, %132, %cst_62 [1] : vector<2x32xf32> to vector<2xf32>
    %134 = vector.shape_cast %133 : vector<2xf32> to vector<2x1xf32>
    %135 = vector.broadcast %134 : vector<2x1xf32> to vector<2x8xf32>
    %136 = arith.addf %1, %135 : vector<2x8xf32>
    %cst_63 = arith.constant 0.000000e+00 : f32
    %137 = vector.broadcast %cst_63 : f32 to vector<2x8xf32>
    %138 = arith.maximumf %136, %137 : vector<2x8xf32>
    %cst_64 = arith.constant dense<0xFF800000> : vector<2xf32>
    %139 = vector.multi_reduction <maximumf>, %138, %cst_64 [1] : vector<2x8xf32> to vector<2xf32>
    %140 = vector.shape_cast %139 : vector<2xf32> to vector<2x1xf32>
    %141 = vector.broadcast %140 : vector<2x1xf32> to vector<2x8xf32>
    %142 = arith.subf %138, %141 : vector<2x8xf32>
    %143 = math.exp %142 : vector<2x8xf32>
    %cst_65 = arith.constant dense<0.000000e+00> : vector<2xf32>
    %144 = vector.multi_reduction <add>, %143, %cst_65 [1] : vector<2x8xf32> to vector<2xf32>
    %145 = vector.shape_cast %144 : vector<2xf32> to vector<2x1xf32>
    %146 = vector.broadcast %145 : vector<2x1xf32> to vector<2x8xf32>
    %147 = arith.divf %143, %146 : vector<2x8xf32>
    %148 = vector.shape_cast %147 : vector<2x8xf32> to vector<2x8x1xf32>
    %149 = vector.broadcast %148 : vector<2x8x1xf32> to vector<2x8x64xf32>
    %150 = arith.mulf %149, %0 : vector<2x8x64xf32>
    %cst_66 = arith.constant dense<0.000000e+00> : vector<2x64xf32>
    %151 = vector.multi_reduction <add>, %150, %cst_66 [1] : vector<2x8x64xf32> to vector<2x64xf32>
    %c2_i32_67 = arith.constant 2 : i32
    %152 = arith.muli %c2_i32_61, %c2_i32_67 : i32
    %c0_i32_68 = arith.constant 0 : i32
    %153 = arith.addi %152, %c0_i32_68 : i32
    %154 = arith.index_cast %153 : i32 to index
    %155 = memref.load %arg0[%154] : memref<8xi32, #tpu.memory_space<smem>>
    %156 = arith.index_cast %155 : i32 to index
    %c0_69 = arith.constant 0 : index
    %157 = vector.load %arg8[%156, %c0_69] : memref<20x128xf32, #tpu.memory_space<vmem>>, vector<1x128xf32>
    %c0_70 = arith.constant 0 : index
    %c0_71 = arith.constant 0 : index
    %158 = vector.load %arg14[%c0_70, %c0_71] : memref<2x128xf32, #tpu.memory_space<vmem>>, vector<1x128xf32>
    tpu.vector_store %arg14[%c0_70, %c0_71], %157 {strides = array<i32>} : memref<2x128xf32, #tpu.memory_space<vmem>>, vector<1x128xf32>,
    %c2_i32_72 = arith.constant 2 : i32
    %159 = arith.muli %c2_i32_61, %c2_i32_72 : i32
    %c1_i32_73 = arith.constant 1 : i32
    %160 = arith.addi %159, %c1_i32_73 : i32
    %161 = arith.index_cast %160 : i32 to index
    %162 = memref.load %arg0[%161] : memref<8xi32, #tpu.memory_space<smem>>
    %163 = arith.index_cast %162 : i32 to index
    %c0_74 = arith.constant 0 : index
    %164 = vector.load %arg8[%163, %c0_74] : memref<20x128xf32, #tpu.memory_space<vmem>>, vector<1x128xf32>
    %c1_75 = arith.constant 1 : index
    %c0_76 = arith.constant 0 : index
    %165 = vector.load %arg14[%c1_75, %c0_76] : memref<2x128xf32, #tpu.memory_space<vmem>>, vector<1x128xf32>
    tpu.vector_store %arg14[%c1_75, %c0_76], %164 {strides = array<i32>} : memref<2x128xf32, #tpu.memory_space<vmem>>, vector<1x128xf32>,
    %c0_77 = arith.constant 0 : index
    %c0_78 = arith.constant 0 : index
    %166 = vector.load %arg14[%c0_77, %c0_78] : memref<2x128xf32, #tpu.memory_space<vmem>>, vector<2x128xf32>
    %cst_79 = arith.constant dense<0.000000e+00> : vector<2x128xf32>
    %167 = tpu.matmul %151, %3, %cst_79 {dimension_numbers = #tpu.dot_dimension_numbers<[1], [0], [0], [1], [0, 0, 1, 1], [], []>} : vector<2x64xf32>, vector<64x128xf32>, vector<2x128xf32> -> vector<2x128xf32>
    %cst_80 = arith.constant dense<0.000000e+00> : vector<2x128xf32>
    %168 = tpu.matmul %124, %4, %cst_80 {dimension_numbers = #tpu.dot_dimension_numbers<[1], [0], [0], [1], [0, 0, 1, 1], [], []>} : vector<2x32xf32>, vector<32x128xf32>, vector<2x128xf32> -> vector<2x128xf32>
    %169 = arith.addf %167, %168 : vector<2x128xf32>
    %170 = arith.addf %169, %166 : vector<2x128xf32>
    %171 = arith.negf %170 : vector<2x128xf32>
    %172 = math.exp %171 : vector<2x128xf32>
    %cst_81 = arith.constant 1.000000e+00 : f32
    %173 = vector.broadcast %cst_81 : f32 to vector<2x128xf32>
    %174 = arith.addf %173, %172 : vector<2x128xf32>
    %175 = arith.divf %173, %174 : vector<2x128xf32>
    %176 = math.tanh %170 : vector<2x128xf32>
    %177 = vector.extract_strided_slice %175 {offsets = [0, 0], sizes = [2, 32], strides = [1, 1]} : vector<2x128xf32> to vector<2x32xf32>
    %178 = vector.extract_strided_slice %175 {offsets = [0, 32], sizes = [2, 32], strides = [1, 1]} : vector<2x128xf32> to vector<2x32xf32>
    %179 = vector.extract_strided_slice %176 {offsets = [0, 64], sizes = [2, 32], strides = [1, 1]} : vector<2x128xf32> to vector<2x32xf32>
    %180 = vector.extract_strided_slice %175 {offsets = [0, 96], sizes = [2, 32], strides = [1, 1]} : vector<2x128xf32> to vector<2x32xf32>
    %181 = arith.mulf %178, %122 : vector<2x32xf32>
    %182 = arith.mulf %177, %179 : vector<2x32xf32>
    %183 = arith.addf %181, %182 : vector<2x32xf32>
    %184 = math.tanh %183 : vector<2x32xf32>
    %185 = arith.mulf %180, %184 : vector<2x32xf32>
    %cst_82 = arith.constant dense<0.000000e+00> : vector<2x128xf32>
    %186 = tpu.matmul %185, %5, %cst_82 {dimension_numbers = #tpu.dot_dimension_numbers<[1], [0], [0], [1], [0, 0, 1, 1], [], []>} : vector<2x32xf32>, vector<32x128xf32>, vector<2x128xf32> -> vector<2x128xf32>
    %187 = vector.broadcast %6 : vector<1x128xf32> to vector<2x128xf32>
    %188 = arith.addf %186, %187 : vector<2x128xf32>
    %189 = vector.shape_cast %188 : vector<2x128xf32> to vector<1x2x128xf32>
    %190 = arith.index_cast %c2_i32_61 : i32 to index
    %c0_83 = arith.constant 0 : index
    %c0_84 = arith.constant 0 : index
    %191 = vector.load %arg11[%190, %c0_83, %c0_84] : memref<4x2x128xf32, #tpu.memory_space<vmem>>, vector<1x2x128xf32>
    tpu.vector_store %arg11[%190, %c0_83, %c0_84], %189 {strides = array<i32>} : memref<4x2x128xf32, #tpu.memory_space<vmem>>, vector<1x2x128xf32>,
    %c3_i32 = arith.constant 3 : i32
    %192 = vector.broadcast %2 : vector<1x32xf32> to vector<2x32xf32>
    %193 = arith.mulf %185, %192 : vector<2x32xf32>
    %cst_85 = arith.constant dense<0.000000e+00> : vector<2xf32>
    %194 = vector.multi_reduction <add>, %193, %cst_85 [1] : vector<2x32xf32> to vector<2xf32>
    %195 = vector.shape_cast %194 : vector<2xf32> to vector<2x1xf32>
    %196 = vector.broadcast %195 : vector<2x1xf32> to vector<2x8xf32>
    %197 = arith.addf %1, %196 : vector<2x8xf32>
    %cst_86 = arith.constant 0.000000e+00 : f32
    %198 = vector.broadcast %cst_86 : f32 to vector<2x8xf32>
    %199 = arith.maximumf %197, %198 : vector<2x8xf32>
    %cst_87 = arith.constant dense<0xFF800000> : vector<2xf32>
    %200 = vector.multi_reduction <maximumf>, %199, %cst_87 [1] : vector<2x8xf32> to vector<2xf32>
    %201 = vector.shape_cast %200 : vector<2xf32> to vector<2x1xf32>
    %202 = vector.broadcast %201 : vector<2x1xf32> to vector<2x8xf32>
    %203 = arith.subf %199, %202 : vector<2x8xf32>
    %204 = math.exp %203 : vector<2x8xf32>
    %cst_88 = arith.constant dense<0.000000e+00> : vector<2xf32>
    %205 = vector.multi_reduction <add>, %204, %cst_88 [1] : vector<2x8xf32> to vector<2xf32>
    %206 = vector.shape_cast %205 : vector<2xf32> to vector<2x1xf32>
    %207 = vector.broadcast %206 : vector<2x1xf32> to vector<2x8xf32>
    %208 = arith.divf %204, %207 : vector<2x8xf32>
    %209 = vector.shape_cast %208 : vector<2x8xf32> to vector<2x8x1xf32>
    %210 = vector.broadcast %209 : vector<2x8x1xf32> to vector<2x8x64xf32>
    %211 = arith.mulf %210, %0 : vector<2x8x64xf32>
    %cst_89 = arith.constant dense<0.000000e+00> : vector<2x64xf32>
    %212 = vector.multi_reduction <add>, %211, %cst_89 [1] : vector<2x8x64xf32> to vector<2x64xf32>
    %c2_i32_90 = arith.constant 2 : i32
    %213 = arith.muli %c3_i32, %c2_i32_90 : i32
    %c0_i32_91 = arith.constant 0 : i32
    %214 = arith.addi %213, %c0_i32_91 : i32
    %215 = arith.index_cast %214 : i32 to index
    %216 = memref.load %arg0[%215] : memref<8xi32, #tpu.memory_space<smem>>
    %217 = arith.index_cast %216 : i32 to index
    %c0_92 = arith.constant 0 : index
    %218 = vector.load %arg8[%217, %c0_92] : memref<20x128xf32, #tpu.memory_space<vmem>>, vector<1x128xf32>
    %c0_93 = arith.constant 0 : index
    %c0_94 = arith.constant 0 : index
    %219 = vector.load %arg14[%c0_93, %c0_94] : memref<2x128xf32, #tpu.memory_space<vmem>>, vector<1x128xf32>
    tpu.vector_store %arg14[%c0_93, %c0_94], %218 {strides = array<i32>} : memref<2x128xf32, #tpu.memory_space<vmem>>, vector<1x128xf32>,
    %c2_i32_95 = arith.constant 2 : i32
    %220 = arith.muli %c3_i32, %c2_i32_95 : i32
    %c1_i32_96 = arith.constant 1 : i32
    %221 = arith.addi %220, %c1_i32_96 : i32
    %222 = arith.index_cast %221 : i32 to index
    %223 = memref.load %arg0[%222] : memref<8xi32, #tpu.memory_space<smem>>
    %224 = arith.index_cast %223 : i32 to index
    %c0_97 = arith.constant 0 : index
    %225 = vector.load %arg8[%224, %c0_97] : memref<20x128xf32, #tpu.memory_space<vmem>>, vector<1x128xf32>
    %c1_98 = arith.constant 1 : index
    %c0_99 = arith.constant 0 : index
    %226 = vector.load %arg14[%c1_98, %c0_99] : memref<2x128xf32, #tpu.memory_space<vmem>>, vector<1x128xf32>
    tpu.vector_store %arg14[%c1_98, %c0_99], %225 {strides = array<i32>} : memref<2x128xf32, #tpu.memory_space<vmem>>, vector<1x128xf32>,
    %c0_100 = arith.constant 0 : index
    %c0_101 = arith.constant 0 : index
    %227 = vector.load %arg14[%c0_100, %c0_101] : memref<2x128xf32, #tpu.memory_space<vmem>>, vector<2x128xf32>
    %cst_102 = arith.constant dense<0.000000e+00> : vector<2x128xf32>
    %228 = tpu.matmul %212, %3, %cst_102 {dimension_numbers = #tpu.dot_dimension_numbers<[1], [0], [0], [1], [0, 0, 1, 1], [], []>} : vector<2x64xf32>, vector<64x128xf32>, vector<2x128xf32> -> vector<2x128xf32>
    %cst_103 = arith.constant dense<0.000000e+00> : vector<2x128xf32>
    %229 = tpu.matmul %185, %4, %cst_103 {dimension_numbers = #tpu.dot_dimension_numbers<[1], [0], [0], [1], [0, 0, 1, 1], [], []>} : vector<2x32xf32>, vector<32x128xf32>, vector<2x128xf32> -> vector<2x128xf32>
    %230 = arith.addf %228, %229 : vector<2x128xf32>
    %231 = arith.addf %230, %227 : vector<2x128xf32>
    %232 = arith.negf %231 : vector<2x128xf32>
    %233 = math.exp %232 : vector<2x128xf32>
    %cst_104 = arith.constant 1.000000e+00 : f32
    %234 = vector.broadcast %cst_104 : f32 to vector<2x128xf32>
    %235 = arith.addf %234, %233 : vector<2x128xf32>
    %236 = arith.divf %234, %235 : vector<2x128xf32>
    %237 = math.tanh %231 : vector<2x128xf32>
    %238 = vector.extract_strided_slice %236 {offsets = [0, 0], sizes = [2, 32], strides = [1, 1]} : vector<2x128xf32> to vector<2x32xf32>
    %239 = vector.extract_strided_slice %236 {offsets = [0, 32], sizes = [2, 32], strides = [1, 1]} : vector<2x128xf32> to vector<2x32xf32>
    %240 = vector.extract_strided_slice %237 {offsets = [0, 64], sizes = [2, 32], strides = [1, 1]} : vector<2x128xf32> to vector<2x32xf32>
    %241 = vector.extract_strided_slice %236 {offsets = [0, 96], sizes = [2, 32], strides = [1, 1]} : vector<2x128xf32> to vector<2x32xf32>
    %242 = arith.mulf %239, %183 : vector<2x32xf32>
    %243 = arith.mulf %238, %240 : vector<2x32xf32>
    %244 = arith.addf %242, %243 : vector<2x32xf32>
    %245 = math.tanh %244 : vector<2x32xf32>
    %246 = arith.mulf %241, %245 : vector<2x32xf32>
    %cst_105 = arith.constant dense<0.000000e+00> : vector<2x128xf32>
    %247 = tpu.matmul %246, %5, %cst_105 {dimension_numbers = #tpu.dot_dimension_numbers<[1], [0], [0], [1], [0, 0, 1, 1], [], []>} : vector<2x32xf32>, vector<32x128xf32>, vector<2x128xf32> -> vector<2x128xf32>
    %248 = vector.broadcast %6 : vector<1x128xf32> to vector<2x128xf32>
    %249 = arith.addf %247, %248 : vector<2x128xf32>
    %250 = vector.shape_cast %249 : vector<2x128xf32> to vector<1x2x128xf32>
    %251 = arith.index_cast %c3_i32 : i32 to index
    %c0_106 = arith.constant 0 : index
    %c0_107 = arith.constant 0 : index
    %252 = vector.load %arg11[%251, %c0_106, %c0_107] : memref<4x2x128xf32, #tpu.memory_space<vmem>>, vector<1x2x128xf32>
    tpu.vector_store %arg11[%251, %c0_106, %c0_107], %250 {strides = array<i32>} : memref<4x2x128xf32, #tpu.memory_space<vmem>>, vector<1x2x128xf32>,
    %c4_i32 = arith.constant 4 : i32
    %c0_108 = arith.constant 0 : index
    %c0_109 = arith.constant 0 : index
    %253 = vector.load %arg12[%c0_108, %c0_109] : memref<2x32xf32, #tpu.memory_space<vmem>>, vector<2x32xf32>
    tpu.vector_store %arg12[%c0_108, %c0_109], %246 {strides = array<i32>} : memref<2x32xf32, #tpu.memory_space<vmem>>, vector<2x32xf32>,
    %c0_110 = arith.constant 0 : index
    %c0_111 = arith.constant 0 : index
    %254 = vector.load %arg13[%c0_110, %c0_111] : memref<2x32xf32, #tpu.memory_space<vmem>>, vector<2x32xf32>
    tpu.vector_store %arg13[%c0_110, %c0_111], %244 {strides = array<i32>} : memref<2x32xf32, #tpu.memory_space<vmem>>, vector<2x32xf32>,
    return
  }
}

</mosaic_0001>

<bundles_post_ra>
// kernel: decoder_decode.1
= control target key start
LH: loop header
LB: loop body
LE: loop exit
PB: predicated region body
PF: predicated region fallthrough
CT: control target
= control target key end

     0   :  { %19 = vsyncpa [#allocation5], 0  ;;  %s2332_s0 = inlined_call_operand.vmem [shape: s32[8], index: 0, kind: input, shape index: {}]   ;;  %s2333_s1 = inlined_call_operand.vmem [shape: f32[2,8], index: 1, kind: input, shape index: {}]   ;;  %s2334_s2 = inlined_call_operand.vmem [shape: f32[2,8,64], index: 2, kind: input, shape index: {}]   ;;  %s2335_s3 = inlined_call_operand.vmem [shape: f32[2,32], index: 3, kind: input, shape index: {}]   ;;  %s2336_s4 = inlined_call_operand.vmem [shape: f32[2,32], index: 4, kind: input, shape index: {}]   ;;  %s2337_s5 = inlined_call_operand.vmem [shape: f32[1,32], index: 5, kind: input, shape index: {}]   ;;  %s2338_s6 = inlined_call_operand.vmem [shape: f32[64,128], index: 6, kind: input, shape index: {}]   ;;  %s2339_s7 = inlined_call_operand.vmem [shape: f32[32,128], index: 7, kind: input, shape index: {}]   ;;  %s2340_s8 = inlined_call_operand.vmem [shape: f32[20,128], index: 8, kind: input, shape index: {}]   ;;  %s2341_s9 = inlined_call_operand.vmem [shape: f32[32,128], index: 9, kind: input, shape index: {}]   ;;  %s2342_s10 = inlined_call_operand.vmem [shape: f32[1,128], index: 10, kind: input, shape index: {}]   ;;  %s2343_s11 = inlined_call_operand.hbm [shape: f32[4,2,128], index: 11, kind: output, shape index: {0}]   ;;  %s2344_s12 = inlined_call_operand.hbm [shape: f32[2,32], index: 12, kind: output, shape index: {1}]   ;;  %s2345_s13 = inlined_call_operand.hbm [shape: f32[2,32], index: 13, kind: output, shape index: {2}]  }
   0x1   :  { %20 = vsyncpa [#allocation4], 0 }
   0x2   :  { %21 = vsyncpa [#allocation8], 0  ;;  %s28_s27 = sshll.u32 %s2332_s0, 4  ;;  %s29_s27 = int_to_ptr.vmem [resolvable:$true] %s28_s27 }
   0x3   :  { %s1808_s28 = scalar_lea.vmem %s29_s27, 16  ;;  %p1813_p1 = scmp.lt.s32.totalorder %s29_s27, %s29_s27 }
   0x4   :  { %p1809_p0 = scmp.ne.s32.totalorder %s29_s27, %s1808_s28  ;;  %p1814_p2 = scmp.lt.s32.totalorder %s1808_s28, %s1808_s28 }
   0x6   :  { %p1815_p3 = por %p1814_p2, %p1813_p1 }
   0x8   :  { %p1816_p4 = pnand %p1815_p3, %p1809_p0 }
   0xa   :  { %1819 = shalt.err (!%p1816_p4)
}
   0xb   :  { %s1892_s29 = smov [#allocation3]  }
   0xc   :  { %31 = dma.vmem_to_smem %s29_s27, 16, %s1892_s29, [#allocation5]  }
   0xd   :  { %1886 = dma.done.wait [#allocation5], 16  }
   0xe   :  { %1887 = vsyncadd [#allocation5], 4294967280 }
   0xf   :  { %55 = sfence }
  0x10   :  { %v1979_v0 = vld [vmem:[%s2337_s5] ss:$0 sm:$0xff]  ;;  %vm86_vm0 = vcmask 254976   ;;  %vm92_vm1 = vcmask 58368   ;;  %v61_v16 = vld [vmem:[%s2338_s6 + $0x8] sm:$0xff]  ;;  %v104_v17 = vlaneseq  ;;  %v1893_v19 = vmov 0.0|0.0  }
  0x11   :  { %v1984_v1 = vld [vmem:[%s2335_s3] sm:$0x3]  ;;  %1659 = vmatprep.subr.bf16.mxu1 %v1893_v19  ;;  %1653 = vmatprep.subr.bf16.mxu0 %v1893_v19  ;;  %v62_v20 = vld [vmem:[%s2338_s6 + $0x10] sm:$0xff]  ;;  %v63_v21 = vld [vmem:[%s2338_s6 + $0x18] sm:$0xff]  ;;  %vm144_vm2 = vcmask 261120   ;;  %vm1894_vm3 = vmmov 0  }
  0x12   :  { %v85_v2 = vmul.f32 %v1979_v0, %v1984_v1  ;;  %v1992_v4 = vld [vmem:[%s2333_s1] sm:$0x3]  ;;  %v105_v22 = vshrl.u32 %v104_v17, 7  ;;  %v2015_v23 = vpack.c.bf16 %v63_v21, %v62_v20  ;;  %v69_v25 = vld [vmem:[%s2339_s7 + $0x8] sm:$0xff]  ;;  %v70_v34 = vld [vmem:[%s2339_s7 + $0x10] sm:$0xff]  ;;  %v1895_v42 = vmov 0.0  }
  0x13   :  { %v60_v15 = vld [vmem:[%s2338_s6] sm:$0xff]  ;;  %v65_v28 = vld [vmem:[%s2338_s6 + $0x28] sm:$0xff]  ;;  %v71_v35 = vld [vmem:[%s2339_s7 + $0x18] sm:$0xff]  ;;  %1497 = vmatprep.mubr.msk.f32.mxu0 %vm1894_vm3, %v1895_v42  ;;  %1516 = vmatprep.mubr.msk.f32.mxu1 %vm1894_vm3, %v1895_v42  ;;  %vm120_vm4 = vcmask 523264   ;;  %vm220_vm5 = vcmask 1041409   ;;  %s1897_s30 = smov 32  }
  0x14   :  { %v87_v3 = vsel %vm86_vm0, %v85_v2, 0.0  ;;  %v2003_v18 = vpack.c.bf16 %v61_v16, %v60_v15  ;;  %v68_v24 = vld [vmem:[%s2339_s7] sm:$0xff]  ;;  %v2033_v29 = vsub.s32 1, %v105_v22  ;;  %v2035_v30 = vsub.s32 0, %v105_v22  ;;  %v66_v37 = vld [vmem:[%s2338_s6 + $0x30] sm:$0xff]  ;;  %v67_v38 = vld [vmem:[%s2338_s6 + $0x38] sm:$0xff] }
  0x15   :  { %88 = vadd.xlane.f32.xlu0 %v87_v3  ;;  %v2024_v26 = vpack.c.bf16 %v69_v25, %v68_v24  ;;  %v64_v27 = vld [vmem:[%s2338_s6 + $0x20] sm:$0xff]  ;;  %v2048_v36 = vpack.c.bf16 %v71_v35, %v70_v34  ;;  %v2059_v41 = vpack.c.bf16 %v67_v38, %v66_v37  ;;  %s135_s6 = sld [smem:[#allocation3]]  ;;  %s1389_s7 = sld [smem:[#allocation3 + $0x1]]  ;;  %v2082_v45 = vld [vmem:[%s2334_s2 + $0x8] sm:$0xff] }
  0x16   :  { %1661 = vmatpush3.bf16.msra.mxu1 %v2003_v18  ;;  %v2037_v31 = vpack.c.bf16 %v65_v28, %v64_v27  ;;  %v2087_v46 = vld [vmem:[%s2334_s2] sm:$0xff]  ;;  %s1896_s2 = smov 64   ;;  %s1898_s14 = smov 96  }
  0x17   :  { %1662 = vmatprep.subr.bf16.mxu1 %v1893_v19  ;;  %1655 = vmatpush3.bf16.msra.mxu0 %v2024_v26  ;;  %s1402_s24 = sld [smem:[#allocation3 + $0x5]]  ;;  %s1408_s16 = sld [smem:[#allocation3 + $0x7]] }
  0x18   :  { %1656 = vmatprep.subr.bf16.mxu0 %v1893_v19 }
  0x1a   :  { %1664 = vmatpush3.bf16.msra.mxu1 %v2015_v23 }
  0x1b   :  { %1665 = vmatprep.subr.bf16.mxu1 %v1893_v19  ;;  %1658 = vmatpush3.bf16.msra.mxu0 %v2048_v36  ;;  %s136_s20 = scalar_lea.vmem %s2340_s8, %s135_s6  ;;  %s140_s23 = scalar_lea.vmem %s2340_s8, %s1389_s7 }
  0x1c   :  { %1671 = vmatprep.subr.bf16.mxu0 %v1893_v19  ;;  %v137_v43 = vld [vmem:[%s136_s20] sm:$0x1]  ;;  %s1396_s6 = sld [smem:[#allocation3 + $0x3]] }
  0x1d   :  { %v141_v44 = vld [vmem:[%s140_s23] sm:$0x1]  ;;  %138 = vst [vmem:[#allocation2] sm:$0x1] %v137_v43  ;;  %s1401_s23 = sld [smem:[#allocation3 + $0x4]] }
  0x1e   :  { %1667 = vmatpush3.bf16.msra.mxu1 %v2037_v31  ;;  %1498 = vmatmul.mubr.msk.f32.vlgmr.msra.gmra.mrb[0].mxu0 %vm144_vm2, %v1984_v1  ;;  %142 = vst [vmem:[#allocation2 + $0x1] sm:$0x1] %v141_v44 }
  0x1f   :  { %1668 = vmatprep.subr.bf16.mxu1 %v1893_v19  ;;  %1527 = vmatprep.mubr.msk.f32.mxu0 %vm1894_vm3, %v1895_v42 }
  0x22   :  { %1670 = vmatpush3.bf16.msra.mxu1 %v2059_v41  ;;  %s464_s22 = scalar_lea.vmem %s2340_s8, %s1396_s6  ;;  %s1078_s6 = scalar_lea.vmem %s2340_s8, %s1408_s16 }
  0x23   :  { %1683 = vmatprep.subr.bf16.mxu1 %v1893_v19  ;;  %s767_s27 = scalar_lea.vmem %s2340_s8, %s1401_s23 }
  0xa2   :  { %v89_v5 = vpop.xlane.xlu0 %88 }
  0xa3   :  { %v90_v6 = vadd.f32 %v89_v5, %v1992_v4 }
  0xa5   :  { %v91_v7 = vmax.f32 %v90_v6, 0.0  ;;  %v143_v6 = vld [vmem:[#allocation2] sm:$0x3] }
  0xa7   :  { %v93_v8 = vsel %vm92_vm1, %v91_v7, -inf }
  0xa8   :  { %94 = vmax.xlane.f32.xlu0 %v93_v8 }
  0xf1   :  { %v214_v3 = vpop.f32.mrb[0].mxu0 }
  0xf2   :  { %v1499_v5 = vpop.f32.mrb[1].mxu0 }
 0x135   :  { %v95_v9 = vpop.xlane.xlu0 %94 }
 0x136   :  { %v96_v10 = vsub.f32 %v91_v7, %v95_v9 }
 0x138   :  { %v97_v11 = vmul.f32 1.442695, %v96_v10 }
 0x13a   :  { %1760 = vpow2.f32 %v97_v11 }
 0x144   :  { %v1761_v12 = vpop.eup %1760 }
 0x145   :  { %v99_v13 = vsel %vm92_vm1, %v1761_v12, 0.0 }
 0x146   :  { %100 = vadd.xlane.f32.xlu1 %v99_v13 }
 0x1d3   :  { %v101_v14 = vpop.xlane.xlu1 %100 }
 0x1d4   :  { %1762 = vrcp.f32 %v101_v14 }
 0x1de   :  { %v1763_v32 = vpop.eup %1762 }
 0x1df   :  { %v103_v33 = vmul.f32 %v1763_v32, %v1761_v12  ;;  %v78_v12 = vld [vmem:[%s2336_s4] sm:$0x3]  ;;  %s771_s4 = scalar_lea.vmem %s2340_s8, %s1402_s24 }
 0x1e1   :  { %v114_v39 = vrot.slane %v103_v33, %v2033_v29  ;;  %v107_v40 = vrot.slane %v103_v33, %v2035_v30 }
 0x1e3   :  { %116 = vbcast.lane.b32.xlu0 %v114_v39, 256  ;;  %109 = vbcast.lane.b32.xlu1 %v107_v40, 256 }
 0x255   :  { %v117_v47 = vpop.permute.xlu0 %116  ;;  %v110_v48 = vpop.permute.xlu1 %109 }
 0x256   :  { %v119_v49 = vmul.f32 %v117_v47, %v2082_v45  ;;  %v118_v50 = vmul.f32 %v110_v48, %v2087_v46 }
 0x258   :  { %v128_v51 = vsel %vm120_vm4, %v119_v49, 0.0  ;;  %v121_v52 = vsel %vm120_vm4, %v118_v50, 0.0  ;;  %v72_v50 = vld [vmem:[%s2341_s9] sm:$0xff] }
 0x259   :  { %v129_v53 = vrot.slane %v128_v51, 4  ;;  %v122_v54 = vrot.slane %v121_v52, 4 }
 0x25b   :  { %v130_v55 = vadd.f32 %v129_v53, %v128_v51  ;;  %v123_v56 = vadd.f32 %v122_v54, %v121_v52  ;;  %v73_v51 = vld [vmem:[%s2341_s9 + $0x8] sm:$0xff]  ;;  %v74_v54 = vld [vmem:[%s2341_s9 + $0x10] sm:$0xff] }
 0x25c   :  { %v2131_v52 = vpack.c.bf16 %v73_v51, %v72_v50 }
 0x25d   :  { %v131_v57 = vrot.slane %v130_v55, 2  ;;  %v124_v58 = vrot.slane %v123_v56, 2 }
 0x25e   :  { %1673 = vmatpush3.bf16.msra.mxu0 %v2131_v52 }
 0x25f   :  { %v132_v59 = vadd.f32 %v131_v57, %v130_v55  ;;  %v125_v60 = vadd.f32 %v124_v58, %v123_v56  ;;  %1674 = vmatprep.subr.bf16.mxu0 %v1893_v19  ;;  %v75_v55 = vld [vmem:[%s2341_s9 + $0x18] sm:$0xff]  ;;  %s1395_s9 = sld [smem:[#allocation3 + $0x2]] }
 0x260   :  { %v2141_v56 = vpack.c.bf16 %v75_v55, %v74_v54 }
 0x261   :  { %v133_v61 = vrot.slane %v132_v59, 1  ;;  %v126_v62 = vrot.slane %v125_v60, 1 }
 0x262   :  { %1676 = vmatpush3.bf16.msra.mxu0 %v2141_v56 }
 0x263   :  { %v134_v63 = vadd.f32 %v133_v61, %v132_v59  ;;  %v127_v1 = vadd.f32 %v126_v62, %v125_v60  ;;  %1677 = vmatprep.subr.bf16.mxu0 %v1893_v19 }
 0x265   :  { %v221_v2 = vsel %vm220_vm5, %v134_v63, %v127_v1  ;;  %s460_s19 = scalar_lea.vmem %s2340_s8, %s1395_s9 }
 0x266   :  { %1517 = vmatmul.mubr.msk.f32.vlgmr.msra.gmra.mrb[0].mxu1 %vm120_vm4, %v221_v2 }
 0x267   :  { %1685 = vmatpush3.bf16.msra.mxu1 %v2003_v18  ;;  %1557 = vmatprep.mubr.msk.f32.mxu1 %vm1894_vm3, %v1895_v42 }
 0x268   :  { %1686 = vmatprep.subr.bf16.mxu1 %v1893_v19 }
 0x26b   :  { %1688 = vmatpush3.bf16.msra.mxu1 %v2015_v23 }
 0x26c   :  { %1689 = vmatprep.subr.bf16.mxu1 %v1893_v19 }
 0x26f   :  { %1691 = vmatpush3.bf16.msra.mxu1 %v2037_v31 }
 0x270   :  { %1692 = vmatprep.subr.bf16.mxu1 %v1893_v19 }
 0x273   :  { %1694 = vmatpush3.bf16.msra.mxu1 %v2059_v41 }
 0x274   :  { %1707 = vmatprep.subr.bf16.mxu1 %v1893_v19 }
 0x339   :  { %v290_v7 = vpop.f32.mrb[0].mxu1 }
 0x33a   :  { %v291_v8 = vadd.f32 %v290_v7, %v214_v3  ;;  %v1518_v9 = vpop.f32.mrb[1].mxu1 }
 0x33c   :  { %v294_v10 = vadd.f32 %v291_v8, %v143_v6 }
 0x33e   :  { %1764 = vtanh.f32 %v294_v10  ;;  %v1392_v13 = vmul.f32 -1.442695, %v294_v10 }
 0x340   :  { %1766 = vpow2.f32 %v1392_v13 }
 0x348   :  { %v1765_v11 = vpop.eup %1764 }
 0x349   :  { %308 = vrot.lane.b32.xlu1 %v1765_v11, %s1896_s2 }
 0x34a   :  { %v1767_v14 = vpop.eup %1766 }
 0x34b   :  { %v298_v15 = vadd.f32 1.0, %v1767_v14 }
 0x34d   :  { %303 = vrot.lane.b32.xlu1 %v78_v12, %s1897_s30  ;;  %1768 = vrcp.f32 %v298_v15 }
 0x357   :  { %v1769_v16 = vpop.eup %1768 }
 0x3bb   :  { %v309_v17 = vpop.permute.xlu1 %308 }
 0x3bc   :  { %v311_v20 = vmul.f32 %v1769_v16, %v309_v17 }
 0x3be   :  { %313 = vrot.lane.b32.xlu1 %v311_v20, %s1897_s30 }
 0x3bf   :  { %v304_v21 = vpop.permute.xlu1 %303 }
 0x3c0   :  { %v306_v22 = vmul.f32 %v1769_v16, %v304_v21  ;;  %v461_v21 = vld [vmem:[%s460_s19] sm:$0x1] }
 0x3c1   :  { %462 = vst [vmem:[#allocation2] sm:$0x1] %v461_v21 }
 0x3c2   :  { %405 = vrot.lane.b32.xlu1 %v1979_v0, %s1898_s14 }
 0x430   :  { %v314_v24 = vpop.permute.xlu1 %313 }
 0x431   :  { %v2113_v25 = vadd.f32 %v314_v24, %v306_v22  ;;  %v465_v22 = vld [vmem:[%s464_s22] sm:$0x1] }
 0x432   :  { %466 = vst [vmem:[#allocation2 + $0x1] sm:$0x1] %v465_v22 }
 0x433   :  { %1770 = vtanh.f32 %v2113_v25 }
 0x434   :  { %v2117_v32 = vpop.permute.xlu1 %405 }
 0x439   :  { %v467_v24 = vld [vmem:[#allocation2] sm:$0x3] }
 0x43d   :  { %v1771_v27 = vpop.eup %1770 }
 0x43e   :  { %319 = vrot.lane.b32.xlu0 %v1771_v27, %s1896_s2  ;;  %v768_v27 = vld [vmem:[%s767_s27] sm:$0x1] }
 0x43f   :  { %769 = vst [vmem:[#allocation2] sm:$0x1] %v768_v27 }
 0x4b0   :  { %v320_v28 = vpop.permute.xlu0 %319 }
 0x4b1   :  { %v322_v33 = vmul.f32 %v1769_v16, %v320_v28  ;;  %v772_v28 = vld [vmem:[%s771_s4] sm:$0x1] }
 0x4b2   :  { %773 = vst [vmem:[#allocation2 + $0x1] sm:$0x1] %v772_v28 }
 0x4b3   :  { %v408_v34 = vmul.f32 %v2117_v32, %v322_v33 }
 0x4b5   :  { %410 = vrot.lane.b32.xlu0 %v408_v34, %s1897_s30 }
 0x527   :  { %v411_v35 = vpop.permute.xlu0 %410 }
 0x528   :  { %v413_v0 = vsel %vm86_vm0, %v411_v35, 0.0 }
 0x529   :  { %414 = vadd.xlane.f32.xlu1 %v413_v0 }
 0x5b6   :  { %v415_v37 = vpop.xlane.xlu1 %414 }
 0x5b7   :  { %v416_v38 = vadd.f32 %v415_v37, %v1992_v4 }
 0x5b9   :  { %v417_v39 = vmax.f32 %v416_v38, 0.0 }
 0x5bb   :  { %v418_v40 = vsel %vm92_vm1, %v417_v39, -inf }
 0x5bc   :  { %419 = vmax.xlane.f32.xlu0 %v418_v40 }
 0x649   :  { %v420_v43 = vpop.xlane.xlu0 %419 }
 0x64a   :  { %v421_v44 = vsub.f32 %v417_v39, %v420_v43 }
 0x64c   :  { %v422_v47 = vmul.f32 1.442695, %v421_v44 }
 0x64e   :  { %1772 = vpow2.f32 %v422_v47 }
 0x658   :  { %v1773_v48 = vpop.eup %1772 }
 0x659   :  { %v424_v49 = vsel %vm92_vm1, %v1773_v48, 0.0 }
 0x65a   :  { %425 = vadd.xlane.f32.xlu0 %v424_v49 }
 0x6e7   :  { %v426_v53 = vpop.xlane.xlu0 %425 }
 0x6e8   :  { %1774 = vrcp.f32 %v426_v53 }
 0x6f2   :  { %v1775_v57 = vpop.eup %1774 }
 0x6f3   :  { %v428_v58 = vmul.f32 %v1775_v57, %v1773_v48 }
 0x6f5   :  { %v439_v59 = vrot.slane %v428_v58, %v2033_v29  ;;  %v432_v60 = vrot.slane %v428_v58, %v2035_v30 }
 0x6f7   :  { %441 = vbcast.lane.b32.xlu1 %v439_v59, 256  ;;  %434 = vbcast.lane.b32.xlu0 %v432_v60, 256 }
 0x6fb   :  { %330 = vrot.lane.b32.xlu1 %v322_v33, %s1897_s30  ;;  %v2193_v33 = vld [vmem:[%s2342_s10] ss:$0 sm:$0xff]  ;;  %s1407_s10 = sld [smem:[#allocation3 + $0x6]] }
 0x701   :  { %s1074_s3 = scalar_lea.vmem %s2340_s8, %s1407_s10  ;;  %s1899_s8 = smov [#allocation7]  }
 0x702   :  { %s1354_s7 = sshll.u32 %s1899_s8, 4  ;;  %s1355_s7 = int_to_ptr.vmem [resolvable:$true] %s1354_s7 }
 0x703   :  { %s1820_s18 = scalar_lea.vmem %s1355_s7, 32  ;;  %p1825_p6 = scmp.lt.s32.totalorder %s1355_s7, %s1355_s7 }
 0x704   :  { %p1821_p5 = scmp.ne.s32.totalorder %s1355_s7, %s1820_s18  ;;  %p1826_p7 = scmp.lt.s32.totalorder %s1820_s18, %s1820_s18 }
 0x706   :  { %p1827_p8 = por %p1826_p7, %p1825_p6 }
 0x708   :  { %p1828_p9 = pnand %p1827_p8, %p1821_p5 }
 0x769   :  { %v442_v61 = vpop.permute.xlu1 %441  ;;  %v435_v62 = vpop.permute.xlu0 %434 }
 0x76a   :  { %v444_v63 = vmul.f32 %v442_v61, %v2082_v45  ;;  %v443_v1 = vmul.f32 %v435_v62, %v2087_v46 }
 0x76c   :  { %v452_v2 = vsel %vm120_vm4, %v444_v63, 0.0  ;;  %v445_v3 = vsel %vm120_vm4, %v443_v1, 0.0 }
 0x76d   :  { %v453_v5 = vrot.slane %v452_v2, 4  ;;  %v446_v6 = vrot.slane %v445_v3, 4  ;;  %v331_v7 = vpop.permute.xlu1 %330 }
 0x76e   :  { %1528 = vmatmul.mubr.msk.f32.vlgmr.msra.gmra.mrb[2].mxu0 %vm144_vm2, %v331_v7 }
 0x76f   :  { %v454_v8 = vadd.f32 %v453_v5, %v452_v2  ;;  %v447_v9 = vadd.f32 %v446_v6, %v445_v3  ;;  %1679 = vmatpush3.bf16.msra.mxu0 %v2024_v26  ;;  %1538 = vmatprep.mubr.msk.f32.mxu0 %vm1894_vm3, %v1895_v42 }
 0x770   :  { %1680 = vmatprep.subr.bf16.mxu0 %v1893_v19 }
 0x771   :  { %v455_v10 = vrot.slane %v454_v8, 2  ;;  %v448_v11 = vrot.slane %v447_v9, 2 }
 0x773   :  { %v456_v12 = vadd.f32 %v455_v10, %v454_v8  ;;  %v449_v13 = vadd.f32 %v448_v11, %v447_v9  ;;  %1682 = vmatpush3.bf16.msra.mxu0 %v2048_v36 }
 0x774   :  { %1695 = vmatprep.subr.bf16.mxu0 %v1893_v19 }
 0x775   :  { %v457_v14 = vrot.slane %v456_v12, 1  ;;  %v450_v15 = vrot.slane %v449_v13, 1 }
 0x776   :  { %1539 = vmatmul.mubr.msk.f32.vlgmr.msra.gmra.mrb[4].mxu0 %vm144_vm2, %v331_v7 }
 0x777   :  { %v458_v16 = vadd.f32 %v457_v14, %v456_v12  ;;  %v451_v17 = vadd.f32 %v450_v15, %v449_v13  ;;  %1697 = vmatpush3.bf16.msra.mxu0 %v2131_v52  ;;  %1568 = vmatprep.mubr.msk.f32.mxu0 %vm1894_vm3, %v1895_v42 }
 0x778   :  { %1698 = vmatprep.subr.bf16.mxu0 %v1893_v19 }
 0x779   :  { %v540_v20 = vsel %vm220_vm5, %v458_v16, %v451_v17 }
 0x77a   :  { %1558 = vmatmul.mubr.msk.f32.vlgmr.msra.gmra.mrb[2].mxu1 %vm120_vm4, %v540_v20 }
 0x77b   :  { %1700 = vmatpush3.bf16.msra.mxu0 %v2141_v56  ;;  %1709 = vmatpush3.bf16.msra.mxu1 %v2003_v18 }
 0x77c   :  { %1701 = vmatprep.subr.bf16.mxu0 %v1893_v19  ;;  %1710 = vmatprep.subr.bf16.mxu1 %v1893_v19 }
 0x77d   :  { %1598 = vmatprep.mubr.msk.f32.mxu1 %vm1894_vm3, %v1895_v42 }
 0x77f   :  { %1712 = vmatpush3.bf16.msra.mxu1 %v2015_v23 }
 0x780   :  { %1713 = vmatprep.subr.bf16.mxu1 %v1893_v19 }
 0x783   :  { %1715 = vmatpush3.bf16.msra.mxu1 %v2037_v31 }
 0x784   :  { %1716 = vmatprep.subr.bf16.mxu1 %v1893_v19 }
 0x787   :  { %1718 = vmatpush3.bf16.msra.mxu1 %v2059_v41 }
 0x788   :  { %1731 = vmatprep.subr.bf16.mxu1 %v1893_v19 }
 0x841   :  { %v400_v34 = vpop.f32.mrb[2].mxu0 }
 0x842   :  { %v401_v35 = vadd.f32 %v2193_v33, %v400_v34  ;;  %v1529_v0 = vpop.f32.mrb[3].mxu0 }
 0x844   :  { %404 = vst [vmem:[#allocation6] sm:$0x3] %v401_v35 }
 0x849   :  { %v534_v37 = vpop.f32.mrb[4].mxu0 }
 0x84a   :  { %v1540_v38 = vpop.f32.mrb[5].mxu0 }
 0x84d   :  { %v609_v39 = vpop.f32.mrb[2].mxu1 }
 0x84e   :  { %v610_v40 = vadd.f32 %v609_v39, %v534_v37  ;;  %v1559_v43 = vpop.f32.mrb[3].mxu1 }
 0x850   :  { %v613_v44 = vadd.f32 %v610_v40, %v467_v24 }
 0x852   :  { %1776 = vtanh.f32 %v613_v44  ;;  %v1399_v48 = vmul.f32 -1.442695, %v613_v44 }
 0x854   :  { %1778 = vpow2.f32 %v1399_v48 }
 0x85c   :  { %v1777_v47 = vpop.eup %1776 }
 0x85d   :  { %623 = vrot.lane.b32.xlu1 %v1777_v47, %s1896_s2 }
 0x85e   :  { %v1779_v49 = vpop.eup %1778 }
 0x85f   :  { %v617_v50 = vadd.f32 1.0, %v1779_v49 }
 0x861   :  { %1780 = vrcp.f32 %v617_v50  ;;  %v1079_v50 = vld [vmem:[%s1078_s6] sm:$0x1] }
 0x86b   :  { %v1781_v51 = vpop.eup %1780 }
 0x86c   :  { %v621_v55 = vmul.f32 %v1781_v51, %v2113_v25 }
 0x8cf   :  { %v624_v53 = vpop.permute.xlu1 %623 }
 0x8d0   :  { %v626_v54 = vmul.f32 %v1781_v51, %v624_v53 }
 0x8d2   :  { %628 = vrot.lane.b32.xlu0 %v626_v54, %s1897_s30 }
 0x944   :  { %v629_v57 = vpop.permute.xlu0 %628 }
 0x945   :  { %v2199_v58 = vadd.f32 %v629_v57, %v621_v55 }
 0x947   :  { %1782 = vtanh.f32 %v2199_v58 }
 0x951   :  { %v1783_v59 = vpop.eup %1782 }
 0x952   :  { %634 = vrot.lane.b32.xlu1 %v1783_v59, %s1896_s2 }
 0x9c4   :  { %v635_v60 = vpop.permute.xlu1 %634 }
 0x9c5   :  { %v637_v61 = vmul.f32 %v1781_v51, %v635_v60 }
 0x9c7   :  { %v715_v62 = vmul.f32 %v637_v61, %v2117_v32 }
 0x9c9   :  { %717 = vrot.lane.b32.xlu0 %v715_v62, %s1897_s30 }
 0xa3b   :  { %v718_v63 = vpop.permute.xlu0 %717 }
 0xa3c   :  { %v720_v1 = vsel %vm86_vm0, %v718_v63, 0.0 }
 0xa3d   :  { %721 = vadd.xlane.f32.xlu1 %v720_v1 }
 0xaca   :  { %v722_v2 = vpop.xlane.xlu1 %721 }
 0xacb   :  { %v723_v25 = vadd.f32 %v722_v2, %v1992_v4 }
 0xacd   :  { %v724_v3 = vmax.f32 %v723_v25, 0.0 }
 0xacf   :  { %v725_v5 = vsel %vm92_vm1, %v724_v3, -inf }
 0xad0   :  { %726 = vmax.xlane.f32.xlu0 %v725_v5 }
 0xb5d   :  { %v727_v6 = vpop.xlane.xlu0 %726 }
 0xb5e   :  { %v728_v7 = vsub.f32 %v724_v3, %v727_v6 }
 0xb60   :  { %v729_v8 = vmul.f32 1.442695, %v728_v7 }
 0xb62   :  { %1784 = vpow2.f32 %v729_v8 }
 0xb6c   :  { %v1785_v9 = vpop.eup %1784 }
 0xb6d   :  { %v731_v10 = vsel %vm92_vm1, %v1785_v9, 0.0 }
 0xb6e   :  { %732 = vadd.xlane.f32.xlu0 %v731_v10 }
 0xbfb   :  { %v733_v11 = vpop.xlane.xlu0 %732 }
 0xbfc   :  { %1786 = vrcp.f32 %v733_v11 }
 0xc06   :  { %v1787_v12 = vpop.eup %1786 }
 0xc07   :  { %v735_v13 = vmul.f32 %v1787_v12, %v1785_v9 }
 0xc09   :  { %v746_v14 = vrot.slane %v735_v13, %v2033_v29  ;;  %v739_v15 = vrot.slane %v735_v13, %v2035_v30 }
 0xc0b   :  { %748 = vbcast.lane.b32.xlu1 %v746_v14, 256  ;;  %741 = vbcast.lane.b32.xlu0 %v739_v15, 256 }
 0xc0f   :  { %639 = vrot.lane.b32.xlu1 %v637_v61, %s1897_s30 }
 0xc7d   :  { %v749_v16 = vpop.permute.xlu1 %748  ;;  %v742_v17 = vpop.permute.xlu0 %741 }
 0xc7e   :  { %v751_v20 = vmul.f32 %v749_v16, %v2082_v45  ;;  %v750_v21 = vmul.f32 %v742_v17, %v2087_v46 }
 0xc80   :  { %v759_v22 = vsel %vm120_vm4, %v751_v20, 0.0  ;;  %v752_v24 = vsel %vm120_vm4, %v750_v21, 0.0 }
 0xc81   :  { %v760_v27 = vrot.slane %v759_v22, 4  ;;  %v753_v28 = vrot.slane %v752_v24, 4  ;;  %v640_v34 = vpop.permute.xlu1 %639 }
 0xc82   :  { %1569 = vmatmul.mubr.msk.f32.vlgmr.msra.gmra.mrb[6].mxu0 %vm144_vm2, %v640_v34 }
 0xc83   :  { %v761_v35 = vadd.f32 %v760_v27, %v759_v22  ;;  %v754_v0 = vadd.f32 %v753_v28, %v752_v24  ;;  %1703 = vmatpush3.bf16.msra.mxu0 %v2024_v26  ;;  %1579 = vmatprep.mubr.msk.f32.mxu0 %vm1894_vm3, %v1895_v42 }
 0xc84   :  { %1704 = vmatprep.subr.bf16.mxu0 %v1893_v19 }
 0xc85   :  { %v762_v37 = vrot.slane %v761_v35, 2  ;;  %v755_v38 = vrot.slane %v754_v0, 2 }
 0xc87   :  { %v763_v39 = vadd.f32 %v762_v37, %v761_v35  ;;  %v756_v40 = vadd.f32 %v755_v38, %v754_v0  ;;  %1706 = vmatpush3.bf16.msra.mxu0 %v2048_v36 }
 0xc88   :  { %1719 = vmatprep.subr.bf16.mxu0 %v1893_v19 }
 0xc89   :  { %v764_v43 = vrot.slane %v763_v39, 1  ;;  %v757_v44 = vrot.slane %v756_v40, 1 }
 0xc8a   :  { %1580 = vmatmul.mubr.msk.f32.vlgmr.msra.gmra.mrb[8].mxu0 %vm144_vm2, %v640_v34 }
 0xc8b   :  { %v765_v47 = vadd.f32 %v764_v43, %v763_v39  ;;  %v758_v48 = vadd.f32 %v757_v44, %v756_v40  ;;  %1721 = vmatpush3.bf16.msra.mxu0 %v2131_v52  ;;  %1609 = vmatprep.mubr.msk.f32.mxu0 %vm1894_vm3, %v1895_v42 }
 0xc8c   :  { %1722 = vmatprep.subr.bf16.mxu0 %v1893_v19 }
 0xc8d   :  { %v847_v49 = vsel %vm220_vm5, %v765_v47, %v758_v48 }
 0xc8e   :  { %1599 = vmatmul.mubr.msk.f32.vlgmr.msra.gmra.mrb[4].mxu1 %vm120_vm4, %v847_v49 }
 0xc8f   :  { %1724 = vmatpush3.bf16.msra.mxu0 %v2141_v56  ;;  %1733 = vmatpush3.bf16.msra.mxu1 %v2003_v18  ;;  %v774_v18 = vld [vmem:[#allocation2] sm:$0x3] }
 0xc90   :  { %1725 = vmatprep.subr.bf16.mxu0 %v1893_v19  ;;  %1734 = vmatprep.subr.bf16.mxu1 %v1893_v19  ;;  %1080 = vst [vmem:[#allocation2 + $0x1] sm:$0x1] %v1079_v50 }
 0xc91   :  { %1639 = vmatprep.mubr.msk.f32.mxu1 %vm1894_vm3, %v1895_v42 }
 0xc93   :  { %1736 = vmatpush3.bf16.msra.mxu1 %v2015_v23  ;;  %v1075_v23 = vld [vmem:[%s1074_s3] sm:$0x1] }
 0xc94   :  { %1737 = vmatprep.subr.bf16.mxu1 %v1893_v19  ;;  %1076 = vst [vmem:[#allocation2] sm:$0x1] %v1075_v23 }
 0xc97   :  { %1739 = vmatpush3.bf16.msra.mxu1 %v2037_v31 }
 0xc98   :  { %1740 = vmatprep.subr.bf16.mxu1 %v1893_v19 }
 0xc9b   :  { %1742 = vmatpush3.bf16.msra.mxu1 %v2059_v41 }
 0xd55   :  { %v709_v31 = vpop.f32.mrb[6].mxu0 }
 0xd56   :  { %v710_v51 = vadd.f32 %v2193_v33, %v709_v31  ;;  %v1570_v53 = vpop.f32.mrb[7].mxu0 }
 0xd58   :  { %714 = vst [vmem:[#allocation6 + $0x2] sm:$0x3] %v710_v51 }
 0xd5d   :  { %v841_v41 = vpop.f32.mrb[8].mxu0 }
 0xd5e   :  { %v1581_v54 = vpop.f32.mrb[9].mxu0 }
 0xd61   :  { %v916_v55 = vpop.f32.mrb[4].mxu1 }
 0xd62   :  { %v917_v57 = vadd.f32 %v916_v55, %v841_v41  ;;  %v1600_v59 = vpop.f32.mrb[5].mxu1  ;;  %v1081_v55 = vld [vmem:[#allocation2] sm:$0x3] }
 0xd64   :  { %v920_v60 = vadd.f32 %v917_v57, %v774_v18 }
 0xd66   :  { %1788 = vtanh.f32 %v920_v60  ;;  %v1405_v62 = vmul.f32 -1.442695, %v920_v60 }
 0xd68   :  { %1790 = vpow2.f32 %v1405_v62 }
 0xd70   :  { %v1789_v61 = vpop.eup %1788 }
 0xd71   :  { %930 = vrot.lane.b32.xlu1 %v1789_v61, %s1896_s2 }
 0xd72   :  { %v1791_v63 = vpop.eup %1790 }
 0xd73   :  { %v924_v1 = vadd.f32 1.0, %v1791_v63 }
 0xd75   :  { %1792 = vrcp.f32 %v924_v1 }
 0xd7f   :  { %v1793_v2 = vpop.eup %1792 }
 0xd80   :  { %v928_v5 = vmul.f32 %v1793_v2, %v2199_v58 }
 0xde3   :  { %v931_v25 = vpop.permute.xlu1 %930 }
 0xde4   :  { %v933_v3 = vmul.f32 %v1793_v2, %v931_v25 }
 0xde6   :  { %935 = vrot.lane.b32.xlu0 %v933_v3, %s1897_s30 }
 0xe58   :  { %v936_v6 = vpop.permute.xlu0 %935 }
 0xe59   :  { %v2251_v7 = vadd.f32 %v936_v6, %v928_v5 }
 0xe5b   :  { %1794 = vtanh.f32 %v2251_v7 }
 0xe65   :  { %v1795_v8 = vpop.eup %1794 }
 0xe66   :  { %941 = vrot.lane.b32.xlu1 %v1795_v8, %s1896_s2 }
 0xed8   :  { %v942_v9 = vpop.permute.xlu1 %941 }
 0xed9   :  { %v944_v10 = vmul.f32 %v1793_v2, %v942_v9 }
 0xedb   :  { %v1022_v11 = vmul.f32 %v944_v10, %v2117_v32 }
 0xedd   :  { %1024 = vrot.lane.b32.xlu0 %v1022_v11, %s1897_s30 }
 0xf4f   :  { %v1025_v12 = vpop.permute.xlu0 %1024 }
 0xf50   :  { %v1027_v13 = vsel %vm86_vm0, %v1025_v12, 0.0 }
 0xf51   :  { %1028 = vadd.xlane.f32.xlu1 %v1027_v13 }
 0xfde   :  { %v1029_v14 = vpop.xlane.xlu1 %1028 }
 0xfdf   :  { %v1030_v58 = vadd.f32 %v1029_v14, %v1992_v4 }
 0xfe1   :  { %v1031_v15 = vmax.f32 %v1030_v58, 0.0 }
 0xfe3   :  { %v1032_v16 = vsel %vm92_vm1, %v1031_v15, -inf }
 0xfe4   :  { %1033 = vmax.xlane.f32.xlu0 %v1032_v16 }
0x1071   :  { %v1034_v17 = vpop.xlane.xlu0 %1033 }
0x1072   :  { %v1035_v20 = vsub.f32 %v1031_v15, %v1034_v17 }
0x1074   :  { %v1036_v21 = vmul.f32 1.442695, %v1035_v20 }
0x1076   :  { %1796 = vpow2.f32 %v1036_v21 }
0x1080   :  { %v1797_v22 = vpop.eup %1796 }
0x1081   :  { %v1038_v32 = vsel %vm92_vm1, %v1797_v22, 0.0 }
0x1082   :  { %1039 = vadd.xlane.f32.xlu0 %v1038_v32 }
0x110f   :  { %v1040_v24 = vpop.xlane.xlu0 %1039 }
0x1110   :  { %1798 = vrcp.f32 %v1040_v24 }
0x111a   :  { %v1799_v27 = vpop.eup %1798 }
0x111b   :  { %v1042_v28 = vmul.f32 %v1799_v27, %v1797_v22 }
0x111d   :  { %v1053_v34 = vrot.slane %v1042_v28, %v2033_v29  ;;  %v1046_v4 = vrot.slane %v1042_v28, %v2035_v30 }
0x111f   :  { %1055 = vbcast.lane.b32.xlu1 %v1053_v34, 256  ;;  %1048 = vbcast.lane.b32.xlu0 %v1046_v4, 256 }
0x1123   :  { %946 = vrot.lane.b32.xlu1 %v944_v10, %s1897_s30 }
0x1191   :  { %v1056_v35 = vpop.permute.xlu1 %1055  ;;  %v1049_v0 = vpop.permute.xlu0 %1048 }
0x1192   :  { %v1058_v37 = vmul.f32 %v1056_v35, %v2082_v45  ;;  %v1057_v38 = vmul.f32 %v1049_v0, %v2087_v46 }
0x1194   :  { %v1066_v39 = vsel %vm120_vm4, %v1058_v37, 0.0  ;;  %v1059_v40 = vsel %vm120_vm4, %v1057_v38, 0.0 }
0x1195   :  { %v1067_v43 = vrot.slane %v1066_v39, 4  ;;  %v1060_v44 = vrot.slane %v1059_v40, 4  ;;  %v947_v47 = vpop.permute.xlu1 %946 }
0x1196   :  { %1610 = vmatmul.mubr.msk.f32.vlgmr.msra.gmra.mrb[10].mxu0 %vm144_vm2, %v947_v47 }
0x1197   :  { %v1068_v29 = vadd.f32 %v1067_v43, %v1066_v39  ;;  %v1061_v30 = vadd.f32 %v1060_v44, %v1059_v40  ;;  %1727 = vmatpush3.bf16.msra.mxu0 %v2024_v26  ;;  %1620 = vmatprep.mubr.msk.f32.mxu0 %vm1894_vm3, %v1895_v42 }
0x1198   :  { %1728 = vmatprep.subr.bf16.mxu0 %v1893_v19 }
0x1199   :  { %v1069_v45 = vrot.slane %v1068_v29, 2  ;;  %v1062_v46 = vrot.slane %v1061_v30, 2 }
0x119b   :  { %v1070_v48 = vadd.f32 %v1069_v45, %v1068_v29  ;;  %v1063_v49 = vadd.f32 %v1062_v46, %v1061_v30  ;;  %1730 = vmatpush3.bf16.msra.mxu0 %v2048_v36 }
0x119c   :  { %1743 = vmatprep.subr.bf16.mxu0 %v1893_v19 }
0x119d   :  { %v1071_v18 = vrot.slane %v1070_v48, 1  ;;  %v1064_v23 = vrot.slane %v1063_v49, 1 }
0x119e   :  { %1621 = vmatmul.mubr.msk.f32.vlgmr.msra.gmra.mrb[12].mxu0 %vm144_vm2, %v947_v47 }
0x119f   :  { %v1072_v50 = vadd.f32 %v1071_v18, %v1070_v48  ;;  %v1065_v31 = vadd.f32 %v1064_v23, %v1063_v49  ;;  %1745 = vmatpush3.bf16.msra.mxu0 %v2131_v52  ;;  %1650 = vmatprep.mubr.msk.f32.mxu0 %vm1894_vm3, %v1895_v42 }
0x11a0   :  { %1746 = vmatprep.subr.bf16.mxu0 %v1893_v19 }
0x11a1   :  { %v1154_v26 = vsel %vm220_vm5, %v1072_v50, %v1065_v31 }
0x11a2   :  { %1640 = vmatmul.mubr.msk.f32.vlgmr.msra.gmra.mrb[6].mxu1 %vm120_vm4, %v1154_v26 }
0x11a3   :  { %1748 = vmatpush3.bf16.msra.mxu0 %v2141_v56 }
0x1269   :  { %v1016_v36 = vpop.f32.mrb[10].mxu0 }
0x126a   :  { %v1017_v51 = vadd.f32 %v2193_v33, %v1016_v36  ;;  %v1611_v53 = vpop.f32.mrb[11].mxu0 }
0x126c   :  { %1021 = vst [vmem:[#allocation6 + $0x4] sm:$0x3] %v1017_v51 }
0x1271   :  { %v1148_v41 = vpop.f32.mrb[12].mxu0 }
0x1272   :  { %v1622_v54 = vpop.f32.mrb[13].mxu0 }
0x1275   :  { %v1223_v52 = vpop.f32.mrb[6].mxu1 }
0x1276   :  { %v1224_v57 = vadd.f32 %v1223_v52, %v1148_v41  ;;  %v1641_v59 = vpop.f32.mrb[7].mxu1 }
0x1278   :  { %v1227_v42 = vadd.f32 %v1224_v57, %v1081_v55 }
0x127a   :  { %1800 = vtanh.f32 %v1227_v42  ;;  %v1411_v60 = vmul.f32 -1.442695, %v1227_v42 }
0x127c   :  { %1802 = vpow2.f32 %v1411_v60 }
0x1284   :  { %v1801_v19 = vpop.eup %1800 }
0x1285   :  { %1237 = vrot.lane.b32.xlu1 %v1801_v19, %s1896_s2 }
0x1286   :  { %v1803_v61 = vpop.eup %1802 }
0x1287   :  { %v1231_v56 = vadd.f32 1.0, %v1803_v61 }
0x1289   :  { %1804 = vrcp.f32 %v1231_v56 }
0x1293   :  { %v1805_v62 = vpop.eup %1804 }
0x1294   :  { %v1235_v2 = vmul.f32 %v1805_v62, %v2251_v7 }
0x12f7   :  { %v1238_v63 = vpop.permute.xlu1 %1237 }
0x12f8   :  { %v1240_v1 = vmul.f32 %v1805_v62, %v1238_v63 }
0x12fa   :  { %1242 = vrot.lane.b32.xlu0 %v1240_v1, %s1897_s30 }
0x136c   :  { %v1243_v25 = vpop.permute.xlu0 %1242 }
0x136d   :  { %v1245_v3 = vadd.f32 %v1243_v25, %v1235_v2 }
0x136f   :  { %1806 = vtanh.f32 %v1245_v3 }
0x1379   :  { %v1807_v5 = vpop.eup %1806 }
0x137a   :  { %1248 = vrot.lane.b32.xlu1 %v1807_v5, %s1896_s2 }
0x137e   :  { %1332 = vrot.lane.b32.xlu1 %v1245_v3, %s1898_s14 }
0x13ec   :  { %v1249_v6 = vpop.permute.xlu1 %1248 }
0x13ed   :  { %v1251_v8 = vmul.f32 %v1805_v62, %v1249_v6 }
0x13ef   :  { %1253 = vrot.lane.b32.xlu0 %v1251_v8, %s1897_s30 }
0x13f0   :  { %v1333_v9 = vpop.permute.xlu1 %1332 }
0x13f1   :  { %1335 = vst.msk [vmem:[#allocation9] sm:$0x3] %vm86_vm0, %v1333_v9 }
0x1461   :  { %v1254_v10 = vpop.permute.xlu0 %1253 }
0x1462   :  { %1330 = vst.msk [vmem:[#allocation7] sm:$0x3] %vm86_vm0, %v1254_v10  ;;  %1651 = vmatmul.mubr.msk.f32.vlgmr.msra.gmra.mrb[14].mxu0 %vm144_vm2, %v1254_v10 }
0x1463   :  { %1831 = shalt.err (!%p1828_p9)
}
0x1464   :  { %s1832_s19 = scalar_lea.hbm %s2344_s12, 32 }
0x1465   :  { %p1833_p10 = scmp.ne.s32.totalorder %s2344_s12, %s1832_s19  ;;  %p1836_p11 = scmp.lt.u32.totalorder %s1832_s19, %s2344_s12 }
0x1467   :  { %p1838_p12 = pnand %p1836_p11, %p1833_p10 }
0x1469   :  { %1841 = shalt.err (!%p1838_p12)
}
0x146a   :  { %1357 = dma.vmem_to_hbm [thread:$0]  %s1355_s7, 32, %s2344_s12, [#allocation8]  }
0x146b   :  { %s1900_s26 = smov [#allocation9]  }
0x146c   :  { %s1364_s27 = sshll.u32 %s1900_s26, 4  ;;  %s1365_s27 = int_to_ptr.vmem [resolvable:$true] %s1364_s27 }
0x146d   :  { %s1842_s28 = scalar_lea.vmem %s1365_s27, 32  ;;  %p1847_p0 = scmp.lt.s32.totalorder %s1365_s27, %s1365_s27 }
0x146e   :  { %p1843_p13 = scmp.ne.s32.totalorder %s1365_s27, %s1842_s28  ;;  %p1848_p1 = scmp.lt.s32.totalorder %s1842_s28, %s1842_s28 }
0x1470   :  { %p1849_p2 = por %p1848_p1, %p1847_p0 }
0x1472   :  { %p1850_p3 = pnand %p1849_p2, %p1843_p13 }
0x1474   :  { %1853 = shalt.err (!%p1850_p3)
}
0x1475   :  { %s1854_s15 = scalar_lea.hbm %s2345_s13, 32 }
0x1476   :  { %p1855_p4 = scmp.ne.s32.totalorder %s2345_s13, %s1854_s15  ;;  %p1858_p5 = scmp.lt.u32.totalorder %s1854_s15, %s2345_s13 }
0x1478   :  { %p1860_p6 = pnand %p1858_p5, %p1855_p4 }
0x147a   :  { %1863 = shalt.err (!%p1860_p6)
}
0x147b   :  { %1367 = dma.vmem_to_hbm [thread:$0]  %s1365_s27, 32, %s2345_s13, [#allocation8]  }
0x147c   :  { %s1901_s3 = smov [#allocation6]  }
0x147d   :  { %s1341_s5 = sshll.u32 %s1901_s3, 4  ;;  %s1342_s5 = int_to_ptr.vmem [resolvable:$true] %s1341_s5 }
0x147e   :  { %s1864_s9 = scalar_lea.vmem %s1342_s5, 128  ;;  %p1869_p8 = scmp.lt.s32.totalorder %s1342_s5, %s1342_s5 }
0x147f   :  { %p1865_p7 = scmp.ne.s32.totalorder %s1342_s5, %s1864_s9  ;;  %p1870_p9 = scmp.lt.s32.totalorder %s1864_s9, %s1864_s9 }
0x1481   :  { %p1871_p10 = por %p1870_p9, %p1869_p8 }
0x1483   :  { %p1872_p11 = pnand %p1871_p10, %p1865_p7 }
0x1535   :  { %v1323_v7 = vpop.f32.mrb[14].mxu0 }
0x1536   :  { %v1324_v11 = vadd.f32 %v2193_v33, %v1323_v7  ;;  %v1652_v12 = vpop.f32.mrb[15].mxu0 }
0x1538   :  { %1328 = vst [vmem:[#allocation6 + $0x6] sm:$0x3] %v1324_v11 }
0x1539   :  { %1875 = shalt.err (!%p1872_p11)
}
0x153a   :  { %s1876_s7 = scalar_lea.hbm %s2343_s11, 128 }
0x153b   :  { %p1877_p12 = scmp.ne.s32.totalorder %s2343_s11, %s1876_s7  ;;  %p1880_p13 = scmp.lt.u32.totalorder %s1876_s7, %s2343_s11 }
0x153d   :  { %p1882_p0 = pnand %p1880_p13, %p1877_p12 }
0x153f   :  { %1885 = shalt.err (!%p1882_p0)
}
0x1540   :  { %s1902_s19 = smov 2  }
0x1541   :  { %1347 = dma.vmem_to_hbm [thread:$0]  %s1342_s5, 128, %s2343_s11, [#allocation4], %s1897_s30, %s1897_s30, %s1902_s19  }
0x1542   :  { %1888 = dma.done.wait [#allocation4], 128  }
0x1543   :  { %1889 = vsyncadd [#allocation4], 4294967168 }
0x1544   :  { %1890 = dma.done.wait [#allocation8], 64  }
0x1545   :  { %1891 = vsyncadd [#allocation8], 4294967232 }
0x1546   :  { %1377 = vsyncpa [#allocation4], 1 }
0x1547   :  { %1378 = vsyncpa [#allocation8], 1 }
0x1548   :  { %1379 = vsyncpa [#allocation5], 1 }

</bundles_post_ra>
